<compile_context>
chip_gen: v7x
topology: tpu7x:2x2x1
jax: 0.10.0
libtpu: 0.0.40
codegen_flags: <defaults>
</compile_context>

<pallas_src>
import functools

import jax
import jax.numpy as jnp
from jax.experimental import pallas as pl
from jax.experimental.pallas import tpu as pltpu


# ---------------------------------------------------------------------------
# VMEM budgeting (generation-aware)
# ---------------------------------------------------------------------------

def _vmem_limit_bytes():
    """Per-call scoped-VMEM budget derived from the local TPU's physical VMEM."""
    try:
        phys = int(pltpu.get_tpu_info().vmem_capacity_bytes)
    except Exception:                       # query unavailable -> assume the smallest (v7x)
        phys = 64 * 1024 * 1024
    if phys >= 100 * 1024 * 1024:           # v5e / v6e: 128 MiB physical
        return (phys * 3) // 4              #   -> ~96 MiB scoped limit
    return (phys * 5) // 8                  # v7x: 64 MiB physical -> ~40 MiB (leave headroom)


def _padded_block_bytes(shape, itemsize):
    """Approximate VMEM footprint of one block (last two dims padded to (8, 128))."""
    shape = tuple(int(d) for d in shape)
    if len(shape) == 1:
        shape = (1,) + shape
    lead = 1
    for d in shape[:-2]:
        lead *= d
    sub = -(-shape[-2] // 8) * 8
    lane = -(-shape[-1] // 128) * 128
    return lead * sub * lane * itemsize


def _pick_hw_tile(HW, C, vmem_limit, const_bytes):
    """Largest 128-multiple THW whose f32 (C, THW) slab fits the per-step VMEM budget.

    Pass 2 holds ~4 such slabs (x + out, double-buffered) plus constants, so the slab budget
    is (vmem_limit - consts)/5, capped at 8 MiB (past that the pipeline is already at ~95%+
    of the HBM roofline).
    """
    slab_budget = (vmem_limit - const_bytes - (2 << 20)) // 5
    slab_budget = max(1 << 20, min(8 << 20, slab_budget))
    limit = max(128, ((slab_budget // 4) // C) // 128 * 128)
    if HW <= limit:
        return HW                               # one full-HW block (legal for any alignment)
    for t in range(limit, 127, -128):           # prefer an exact divisor -> no masked tile
        if HW % t == 0:
            return t
    return limit                                # no 128-aligned divisor: last tile is masked


# ---------------------------------------------------------------------------
# Shared per-batch epilogue (runs once per batch, inside either kernel)
# ---------------------------------------------------------------------------

def _epilogue(num, l, xsum, hw, wz_w, cvec, spq_w, spv_w, svec):
    """From the HW reductions build ch_score (C,1) and the folded spatial weight/bias."""
    wz_b, ln_w, ln_b = cvec[:, 0:1], cvec[:, 1:2], cvec[:, 2:3]     # (C, 1) each
    spq_b, spv_b = svec[:, 0:1], svec[:, 1:2]                       # (Ch, 1) each

    # ---- channel-only branch ----
    ch_z = num / l                                                  # exact (once per batch)
    ch_z = jnp.dot(wz_w, ch_z, preferred_element_type=jnp.float32) + wz_b      # (C, 1)
    mu = jnp.mean(ch_z, axis=0, keepdims=True)
    var = jnp.mean((ch_z - mu) ** 2, axis=0, keepdims=True)
    ch_z = (ch_z - mu) * jax.lax.rsqrt(var + 1e-5)
    ch_score = jax.nn.sigmoid(ch_z * ln_w + ln_b)                   # (C, 1)

    # ---- spatial-only branch ----
    xmean = xsum / hw                                               # (C, 1)
    spq = jnp.dot(spq_w, xmean, preferred_element_type=jnp.float32) + spq_b    # (Ch, 1)
    spq = spq - jnp.max(spq, axis=0, keepdims=True)
    e = jnp.exp(spq)
    sp_attn = e / jnp.sum(e, axis=0, keepdims=True)                 # (Ch, 1), exact
    # Fold the attention vector through sp_Wv: applying it later is a (1, C) mat-vec.
    sp_w_eff = jnp.sum(spv_w * sp_attn, axis=0, keepdims=True)      # (1, C)
    sp_b_eff = jnp.sum(spv_b * sp_attn, axis=0, keepdims=True)      # (1, 1)
    return ch_score, sp_w_eff, sp_b_eff


# ---------------------------------------------------------------------------
# Fast path: fused single-pass kernel (per-batch x resident in VMEM)
# ---------------------------------------------------------------------------

def _fused_kernel(x_ref, w1_ref, b1_ref, wz_w_ref, cvec_ref, spq_w_ref, spv_w_ref, svec_ref,
                  out_ref):
    """grid=(B,); x block = (1, C, HW).  x read once; reductions + epilogue + gates fused."""
    Ch = spq_w_ref.shape[0]
    x = x_ref[0]                                                    # (C, HW) f32
    xb = x.astype(jnp.bfloat16)

    # Fused bf16 MXU matmul: rows [0:Ch] = ch_Wv(x), row Ch = ch_Wq(x).
    proj = jnp.dot(w1_ref[...], xb, preferred_element_type=jnp.float32) + b1_ref[...]
    ch_v = proj[:Ch, :]                                             # (Ch, HW)
    ch_q = proj[Ch:Ch + 1, :]                                       # (1, HW)

    # Whole HW axis is resident -> plain (exact) softmax, no online machinery.
    m = jnp.max(ch_q, axis=1, keepdims=True)
    p = jnp.exp(ch_q - m)                                           # (1, HW)
    l = jnp.sum(p, axis=1, keepdims=True)                           # (1, 1)
    num = jax.lax.dot_general(ch_v, p, (((1,), (1,)), ((), ())),
                              preferred_element_type=jnp.float32)   # (Ch, 1)
    xsum = jnp.sum(x, axis=1, keepdims=True)                        # (C, 1)

    ch_score, sp_w_eff, sp_b_eff = _epilogue(
        num, l, xsum, x.shape[1],
        wz_w_ref[...], cvec_ref[...], spq_w_ref[...], spv_w_ref[...], svec_ref[...])

    sp_z = jnp.dot(sp_w_eff.astype(jnp.bfloat16), xb,
                   preferred_element_type=jnp.float32) + sp_b_eff   # (1, HW)
    sp_score = jax.nn.sigmoid(sp_z)
    out_ref[0] = (x * (ch_score + sp_score)).astype(out_ref.dtype)


# ---------------------------------------------------------------------------
# Fallback: two-pass, HW-tiled (large spatial maps)
# ---------------------------------------------------------------------------

def _reduce_kernel(x_ref, w1_ref, b1_ref, wz_w_ref, cvec_ref, spq_w_ref, spv_w_ref, svec_ref,
                   ch_score_ref, sp_w_eff_ref, sp_b_eff_ref,
                   m_ref, l_ref, num_ref, xsum_ref, *, hw, needs_mask):
    """Pass 1: per-batch reductions with online softmax.  Grid = (B, HW_tiles)."""
    t = pl.program_id(1)
    n_t = pl.num_programs(1)
    Ch = num_ref.shape[0]
    thw = x_ref.shape[2]

    @pl.when(t == 0)
    def _init():
        m_ref[...] = jnp.full(m_ref.shape, -1e30, jnp.float32)
        l_ref[...] = jnp.zeros_like(l_ref)
        num_ref[...] = jnp.zeros_like(num_ref)
        xsum_ref[...] = jnp.zeros_like(xsum_ref)

    x = x_ref[0]                                                    # (C, THW) f32
    if needs_mask:
        # Last tile may extend past HW (cdiv grid): mask out-of-range lanes everywhere.
        lane = jax.lax.broadcasted_iota(jnp.int32, (1, thw), 1)
        valid = lane < (hw - t * thw)                               # (1, THW) bool
        x = jnp.where(valid, x, 0.0)
    xb = x.astype(jnp.bfloat16)

    proj = jnp.dot(w1_ref[...], xb, preferred_element_type=jnp.float32) + b1_ref[...]
    ch_v = proj[:Ch, :]                                             # (Ch, THW)
    ch_q = proj[Ch:Ch + 1, :]                                       # (1, THW)
    if needs_mask:
        ch_q = jnp.where(valid, ch_q, -1e30)

    # Running spatial sum of x (the sp_Wq 1x1 conv commutes with the spatial mean).
    xsum_ref[...] += jnp.sum(x, axis=1, keepdims=True)

    # Online softmax over the spatial axis (channel-only branch).
    m_prev = m_ref[...]
    m_new = jnp.maximum(m_prev, jnp.max(ch_q, axis=1, keepdims=True))
    alpha = jnp.exp(m_prev - m_new)
    p = jnp.exp(ch_q - m_new)                                       # (1, THW)
    if needs_mask:
        p = jnp.where(valid, p, 0.0)
    l_ref[...] = alpha * l_ref[...] + jnp.sum(p, axis=1, keepdims=True)
    num_tile = jax.lax.dot_general(ch_v, p, (((1,), (1,)), ((), ())),
                                   preferred_element_type=jnp.float32)   # (Ch, 1)
    num_ref[...] = alpha * num_ref[...] + num_tile
    m_ref[...] = m_new

    @pl.when(t == n_t - 1)
    def _finalize():
        ch_score, sp_w_eff, sp_b_eff = _epilogue(
            num_ref[...], l_ref[...], xsum_ref[...], hw,
            wz_w_ref[...], cvec_ref[...], spq_w_ref[...], spv_w_ref[...], svec_ref[...])
        ch_score_ref[0] = ch_score
        sp_w_eff_ref[0] = sp_w_eff
        sp_b_eff_ref[0] = sp_b_eff


def _apply_kernel(x_ref, ch_score_ref, sp_w_eff_ref, sp_b_eff_ref, out_ref):
    """Pass 2: out = x * (ch_score + sigmoid(w_eff @ x + b_eff)).  Fully parallel grid."""
    x = x_ref[0]                                                    # (C, THW) f32
    xb = x.astype(jnp.bfloat16)
    w = sp_w_eff_ref[0].astype(jnp.bfloat16)                        # (1, C)
    sp_z = jnp.dot(w, xb, preferred_element_type=jnp.float32) + sp_b_eff_ref[0]
    sp_score = jax.nn.sigmoid(sp_z)                                 # (1, THW)
    out_ref[0] = (x * (ch_score_ref[0] + sp_score)).astype(out_ref.dtype)


# ---------------------------------------------------------------------------
# Wrapper
# ---------------------------------------------------------------------------

def parallel_polarized_self_attention(x_nchw, params, *, hw_tile=None,
                                      force_two_pass=False, out_dtype=None):
    """x_nchw: (B, C, H, W) float; params: dict from init_params. Returns (B, C, H, W).

    out_dtype=jnp.bfloat16 halves the output HBM stream (numerics tradeoff, off by default).
    """
    B, C, H, W = x_nchw.shape
    HW = H * W
    Ch = C // 2
    out_dtype = x_nchw.dtype if out_dtype is None else out_dtype
    x = x_nchw.reshape(B, C, HW).astype(jnp.float32)                # free reshape, NO transpose

    # Fused channel-branch projection: rows [0:Ch] = ch_Wv, row Ch = ch_Wq (bf16 for the MXU).
    # NOTE: ch_q logits come from a bf16 matmul of a bf16 x cast (loose vs f32 ref; the op is
    # bandwidth-bound so full-f32 projection would not buy speed, only fidelity).
    w1 = jnp.concatenate([params["ch_wv_w"], params["ch_wq_w"]], axis=0).astype(jnp.bfloat16)
    b1 = jnp.concatenate([params["ch_wv_b"], params["ch_wq_b"]], axis=0).astype(jnp.float32)
    f32 = lambda k: params[k].astype(jnp.float32)
    wz_w, spq_w, spv_w = f32("ch_wz_w"), f32("sp_wq_w"), f32("sp_wv_w")
    # Pack the small per-channel vectors (each alone would pad to 128 lanes in VMEM and get
    # its own narrow DMA): cvec = [ch_Wz bias | LN weight | LN bias], svec = [spq bias | spv bias].
    cvec = jnp.concatenate([f32("ch_wz_b"), f32("ln_w"), f32("ln_b")], axis=1)      # (C, 3)
    svec = jnp.concatenate([f32("sp_wq_b"), f32("sp_wv_b")], axis=1)                # (Ch, 2)

    consts = (w1, b1, wz_w, cvec, spq_w, spv_w, svec)
    const_bytes = 2 * sum(_padded_block_bytes(a.shape, a.dtype.itemsize) for a in consts)
    vmem_limit = _vmem_limit_bytes()

    def const_spec(shape):
        nd = len(shape)
        return pl.BlockSpec(shape, lambda *_, _nd=nd: (0,) * _nd)

    const_specs = [const_spec(a.shape) for a in consts]

    def compiler(sem):
        return pltpu.CompilerParams(dimension_semantics=sem, vmem_limit_bytes=vmem_limit)

    # ---- fast path: per-batch (C, HW) slab fits VMEM -> single fused kernel (2x traffic) ----
    x_slab = _padded_block_bytes((C, HW), 4)
    fused_bytes = 4 * x_slab + (3 * x_slab) // 2 + const_bytes      # x+out dbuf + intermediates
    if (not force_two_pass) and hw_tile is None and fused_bytes + (2 << 20) <= vmem_limit:
        out = pl.pallas_call(
            _fused_kernel,
            out_shape=jax.ShapeDtypeStruct((B, C, HW), out_dtype),
            grid_spec=pltpu.PrefetchScalarGridSpec(
                num_scalar_prefetch=0,
                grid=(B,),
                in_specs=[pl.BlockSpec((1, C, HW), lambda b: (b, 0, 0))] + const_specs,
                out_specs=pl.BlockSpec((1, C, HW), lambda b: (b, 0, 0))),
            compiler_params=compiler(("parallel",)),
        )(x, *consts)
        return out.reshape(B, C, H, W)

    # ---- fallback: two-pass, HW-tiled (x read twice -> 3x traffic, bounded VMEM) ----
    THW = _pick_hw_tile(HW, C, vmem_limit, const_bytes) if hw_tile is None else hw_tile
    assert THW == HW or THW % 128 == 0, (HW, THW)
    T = (HW + THW - 1) // THW
    needs_mask = (HW % THW) != 0            # last tile partial: mask lanes >= HW in-kernel

    ch_score, sp_w_eff, sp_b_eff = pl.pallas_call(
        functools.partial(_reduce_kernel, hw=HW, needs_mask=needs_mask),
        out_shape=(jax.ShapeDtypeStruct((B, C, 1), jnp.float32),
                   jax.ShapeDtypeStruct((B, 1, C), jnp.float32),
                   jax.ShapeDtypeStruct((B, 1, 1), jnp.float32)),
        grid_spec=pltpu.PrefetchScalarGridSpec(
            num_scalar_prefetch=0,
            grid=(B, T),
            in_specs=[pl.BlockSpec((1, C, THW), lambda b, t: (b, 0, t))] + const_specs,
            out_specs=[pl.BlockSpec((1, C, 1), lambda b, t: (b, 0, 0)),
                       pl.BlockSpec((1, 1, C), lambda b, t: (b, 0, 0)),
                       pl.BlockSpec((1, 1, 1), lambda b, t: (b, 0, 0))],
            scratch_shapes=[pltpu.VMEM((1, 1), jnp.float32),    # running softmax max
                            pltpu.VMEM((1, 1), jnp.float32),    # running softmax denom
                            pltpu.VMEM((Ch, 1), jnp.float32),   # running softmax numerator
                            pltpu.VMEM((C, 1), jnp.float32)]),  # running spatial sum of x
        compiler_params=compiler(("parallel", "arbitrary")),
    )(x, *consts)

    out = pl.pallas_call(
        _apply_kernel,
        out_shape=jax.ShapeDtypeStruct((B, C, HW), out_dtype),
        grid_spec=pltpu.PrefetchScalarGridSpec(
            num_scalar_prefetch=0,
            grid=(B, T),
            in_specs=[pl.BlockSpec((1, C, THW), lambda b, t: (b, 0, t)),
                      pl.BlockSpec((1, C, 1), lambda b, t: (b, 0, 0)),
                      pl.BlockSpec((1, 1, C), lambda b, t: (b, 0, 0)),
                      pl.BlockSpec((1, 1, 1), lambda b, t: (b, 0, 0))],
            out_specs=pl.BlockSpec((1, C, THW), lambda b, t: (b, 0, t))),
        compiler_params=compiler(("parallel", "parallel")),
    )(x, ch_score, sp_w_eff, sp_b_eff)

    return out.reshape(B, C, H, W)


# ---------------------------------------------------------------------------
# Parameters + pure-JAX reference (validation)
# ---------------------------------------------------------------------------

def init_params(key, C):
    """Synthetic parameters. Conv2d(cin, cout, 1) weights stored as (cout, cin); biases (cout, 1)."""
    Ch = C // 2
    ks = jax.random.split(key, 10)

    def w(k, cout, cin, scale=0.05):
        return jax.random.normal(k, (cout, cin), jnp.float32) * scale

    def b(k, cout, scale=0.02):
        return jax.random.normal(k, (cout, 1), jnp.float32) * scale

    return {
        "ch_wv_w": w(ks[0], Ch, C), "ch_wv_b": b(ks[1], Ch),
        "ch_wq_w": w(ks[2], 1, C),  "ch_wq_b": b(ks[3], 1),
        "ch_wz_w": w(ks[4], C, Ch), "ch_wz_b": b(ks[5], C),
        # LayerNorm default init: weight=1, bias=0
        "ln_w": jnp.ones((C, 1), jnp.float32), "ln_b": jnp.zeros((C, 1), jnp.float32),
        "sp_wv_w": w(ks[6], Ch, C), "sp_wv_b": b(ks[7], Ch),
        "sp_wq_w": w(ks[8], Ch, C), "sp_wq_b": b(ks[9], Ch),
    }


def reference(x_nchw, params):
    """Pure-JAX f32 reference mirroring the PyTorch forward exactly."""
    B, C, H, W = x_nchw.shape
    x = x_nchw.reshape(B, C, H * W)

    def conv1x1(inp, wk, bk):
        return jnp.einsum('oc,bcn->bon', params[wk], inp) + params[bk][None]

    ch_v = conv1x1(x, "ch_wv_w", "ch_wv_b")                           # (B, C/2, HW)
    ch_q = conv1x1(x, "ch_wq_w", "ch_wq_b")                           # (B, 1, HW)
    ch_q = jax.nn.softmax(ch_q, axis=-1)                              # softmax over HW
    ch_z = jnp.einsum('bcn,bdn->bcd', ch_v, ch_q)                     # (B, C/2, 1)
    ch_z = jnp.einsum('oc,bcd->bod', params["ch_wz_w"], ch_z) + params["ch_wz_b"][None]
    mu = jnp.mean(ch_z, axis=1, keepdims=True)
    var = jnp.mean((ch_z - mu) ** 2, axis=1, keepdims=True)
    ch_z = (ch_z - mu) / jnp.sqrt(var + 1e-5) * params["ln_w"][None] + params["ln_b"][None]
    ch_out = jax.nn.sigmoid(ch_z) * x

    sp_v = conv1x1(x, "sp_wv_w", "sp_wv_b")                           # (B, C/2, HW)
    sp_q = conv1x1(x, "sp_wq_w", "sp_wq_b")                           # (B, C/2, HW)
    sp_q = jnp.mean(sp_q, axis=-1, keepdims=True)                     # AdaptiveAvgPool2d(1)
    sp_q = jax.nn.softmax(sp_q, axis=1)                               # softmax over C/2
    sp_z = jnp.sum(sp_v * sp_q, axis=1, keepdims=True)                # (B, 1, HW)
    sp_out = jax.nn.sigmoid(sp_z) * x

    return (ch_out + sp_out).reshape(B, C, H, W)


if __name__ == "__main__":
    key = jax.random.PRNGKey(0)
    kx, kp = jax.random.split(key)

    B, C, H, W = 2, 64, 16, 16
    x = jax.random.normal(kx, (B, C, H, W), dtype=jnp.float32)
    params = init_params(kp, C)
    ref = reference(x, params)

    # 1) fused single-pass path (per-batch slab easily fits VMEM).
    out_fused = jax.block_until_ready(parallel_polarized_self_attention(x, params))
    # 2) two-pass tiled fallback with 128-wide tiles (exercises online softmax / running mean).
    out_two = jax.block_until_ready(
        parallel_polarized_self_attention(x, params, force_two_pass=True, hw_tile=128))

    assert out_fused.shape == (B, C, H, W), out_fused.shape
    for out in (out_fused, out_two):
        # bf16 MXU matmuls -> compare against the f32 reference loosely.
        assert jnp.allclose(out, ref, atol=2e-2, rtol=2e-2), \
            f"mismatch vs reference, max abs err {jnp.max(jnp.abs(out - ref))}"

    # 3) non-128-divisible spatial size -> masked partial tile in the two-pass path.
    H2 = W2 = 12                                  # HW = 144 (no 128-aligned divisor)
    x2 = jax.random.normal(kx, (B, C, H2, W2), dtype=jnp.float32)
    ref2 = reference(x2, params)
    out2 = jax.block_until_ready(
        parallel_polarized_self_attention(x2, params, force_two_pass=True, hw_tile=128))
    assert jnp.allclose(out2, ref2, atol=2e-2, rtol=2e-2), \
        f"masked-tile mismatch, max abs err {jnp.max(jnp.abs(out2 - ref2))}"

    print("KERNEL_OK")
</pallas_src>

<mosaic_0001>
module attributes {stable_mosaic.version = 11 : i64} {
  func.func @_fused_kernel(%arg0: i32, %arg1: memref<1x64x256xf32, #tpu.memory_space<vmem>>, %arg2: memref<33x64xbf16, #tpu.memory_space<vmem>>, %arg3: memref<33x1xf32, #tpu.memory_space<vmem>>, %arg4: memref<64x32xf32, #tpu.memory_space<vmem>>, %arg5: memref<64x3xf32, #tpu.memory_space<vmem>>, %arg6: memref<32x64xf32, #tpu.memory_space<vmem>>, %arg7: memref<32x64xf32, #tpu.memory_space<vmem>>, %arg8: memref<32x2xf32, #tpu.memory_space<vmem>>, %arg9: memref<1x64x256xf32, #tpu.memory_space<vmem>>) attributes {dimension_semantics = [#tpu.dimension_semantics<parallel>], iteration_bounds = array<i64: 2>, scalar_prefetch = 0 : i64, scratch_operands = 0 : i64, tpu.core_type = #tpu.core_type<tc>, window_params = [{transform_indices = @transform_0, window_bounds = array<i64: 1, 64, 256>}, {pipeline_mode = #tpu.pipeline_mode<synchronous>, transform_indices = @transform_1, window_bounds = array<i64: 33, 64>}, {pipeline_mode = #tpu.pipeline_mode<synchronous>, transform_indices = @transform_2, window_bounds = array<i64: 33, 1>}, {pipeline_mode = #tpu.pipeline_mode<synchronous>, transform_indices = @transform_3, window_bounds = array<i64: 64, 32>}, {pipeline_mode = #tpu.pipeline_mode<synchronous>, transform_indices = @transform_4, window_bounds = array<i64: 64, 3>}, {pipeline_mode = #tpu.pipeline_mode<synchronous>, transform_indices = @transform_5, window_bounds = array<i64: 32, 64>}, {pipeline_mode = #tpu.pipeline_mode<synchronous>, transform_indices = @transform_6, window_bounds = array<i64: 32, 64>}, {pipeline_mode = #tpu.pipeline_mode<synchronous>, transform_indices = @transform_7, window_bounds = array<i64: 32, 2>}, {transform_indices = @transform_8, window_bounds = array<i64: 1, 64, 256>}]} {
    %c0 = arith.constant 0 : index
    %c0_0 = arith.constant 0 : index
    %c0_1 = arith.constant 0 : index
    %0 = vector.load %arg1[%c0, %c0_0, %c0_1] : memref<1x64x256xf32, #tpu.memory_space<vmem>>, vector<1x64x256xf32>
    %1 = vector.shape_cast %0 : vector<1x64x256xf32> to vector<64x256xf32>
    %2 = arith.truncf %1 : vector<64x256xf32> to vector<64x256xbf16>
    %c0_2 = arith.constant 0 : index
    %c0_3 = arith.constant 0 : index
    %3 = vector.load %arg2[%c0_2, %c0_3] : memref<33x64xbf16, #tpu.memory_space<vmem>>, vector<33x64xbf16>
    %cst = arith.constant dense<0.000000e+00> : vector<33x256xf32>
    %4 = tpu.matmul %3, %2, %cst {dimension_numbers = #tpu.dot_dimension_numbers<[1], [0], [0], [1], [0, 0, 1, 1], [], []>} : vector<33x64xbf16>, vector<64x256xbf16>, vector<33x256xf32> -> vector<33x256xf32>
    %c0_4 = arith.constant 0 : index
    %c0_5 = arith.constant 0 : index
    %5 = vector.load %arg3[%c0_4, %c0_5] : memref<33x1xf32, #tpu.memory_space<vmem>>, vector<33x1xf32>
    %6 = vector.broadcast %5 : vector<33x1xf32> to vector<33x256xf32>
    %7 = arith.addf %4, %6 : vector<33x256xf32>
    %8 = vector.extract_strided_slice %7 {offsets = [0, 0], sizes = [32, 256], strides = [1, 1]} : vector<33x256xf32> to vector<32x256xf32>
    %9 = vector.extract_strided_slice %7 {offsets = [32, 0], sizes = [1, 256], strides = [1, 1]} : vector<33x256xf32> to vector<1x256xf32>
    %cst_6 = arith.constant dense<0xFF800000> : vector<1xf32>
    %10 = vector.multi_reduction <maximumf>, %9, %cst_6 [1] : vector<1x256xf32> to vector<1xf32>
    %11 = vector.shape_cast %10 : vector<1xf32> to vector<1x1xf32>
    %12 = vector.broadcast %11 : vector<1x1xf32> to vector<1x256xf32>
    %13 = arith.subf %9, %12 : vector<1x256xf32>
    %14 = math.exp %13 : vector<1x256xf32>
    %cst_7 = arith.constant dense<0.000000e+00> : vector<1xf32>
    %15 = vector.multi_reduction <add>, %14, %cst_7 [1] : vector<1x256xf32> to vector<1xf32>
    %16 = vector.shape_cast %15 : vector<1xf32> to vector<1x1xf32>
    %cst_8 = arith.constant dense<0.000000e+00> : vector<32x1xf32>
    %17 = tpu.matmul %8, %14, %cst_8 {dimension_numbers = #tpu.dot_dimension_numbers<[1], [1], [0], [0], [0, 0, 1, 0], [], []>} : vector<32x256xf32>, vector<1x256xf32>, vector<32x1xf32> -> vector<32x1xf32>
    %cst_9 = arith.constant dense<0.000000e+00> : vector<64xf32>
    %18 = vector.multi_reduction <add>, %1, %cst_9 [1] : vector<64x256xf32> to vector<64xf32>
    %19 = vector.shape_cast %18 : vector<64xf32> to vector<64x1xf32>
    %c0_10 = arith.constant 0 : index
    %c0_11 = arith.constant 0 : index
    %20 = vector.load %arg4[%c0_10, %c0_11] : memref<64x32xf32, #tpu.memory_space<vmem>>, vector<64x32xf32>
    %c0_12 = arith.constant 0 : index
    %c0_13 = arith.constant 0 : index
    %21 = vector.load %arg5[%c0_12, %c0_13] : memref<64x3xf32, #tpu.memory_space<vmem>>, vector<64x3xf32>
    %c0_14 = arith.constant 0 : index
    %c0_15 = arith.constant 0 : index
    %22 = vector.load %arg6[%c0_14, %c0_15] : memref<32x64xf32, #tpu.memory_space<vmem>>, vector<32x64xf32>
    %c0_16 = arith.constant 0 : index
    %c0_17 = arith.constant 0 : index
    %23 = vector.load %arg7[%c0_16, %c0_17] : memref<32x64xf32, #tpu.memory_space<vmem>>, vector<32x64xf32>
    %c0_18 = arith.constant 0 : index
    %c0_19 = arith.constant 0 : index
    %24 = vector.load %arg8[%c0_18, %c0_19] : memref<32x2xf32, #tpu.memory_space<vmem>>, vector<32x2xf32>
    %25 = vector.extract_strided_slice %21 {offsets = [0, 0], sizes = [64, 1], strides = [1, 1]} : vector<64x3xf32> to vector<64x1xf32>
    %26 = vector.extract_strided_slice %21 {offsets = [0, 1], sizes = [64, 1], strides = [1, 1]} : vector<64x3xf32> to vector<64x1xf32>
    %27 = vector.extract_strided_slice %21 {offsets = [0, 2], sizes = [64, 1], strides = [1, 1]} : vector<64x3xf32> to vector<64x1xf32>
    %28 = vector.extract_strided_slice %24 {offsets = [0, 0], sizes = [32, 1], strides = [1, 1]} : vector<32x2xf32> to vector<32x1xf32>
    %29 = vector.extract_strided_slice %24 {offsets = [0, 1], sizes = [32, 1], strides = [1, 1]} : vector<32x2xf32> to vector<32x1xf32>
    %30 = vector.broadcast %16 : vector<1x1xf32> to vector<32x1xf32>
    %31 = arith.divf %17, %30 : vector<32x1xf32>
    %cst_20 = arith.constant dense<0.000000e+00> : vector<64x1xf32>
    %32 = tpu.matmul %20, %31, %cst_20 {dimension_numbers = #tpu.dot_dimension_numbers<[1], [0], [0], [1], [0, 0, 1, 1], [], []>} : vector<64x32xf32>, vector<32x1xf32>, vector<64x1xf32> -> vector<64x1xf32>
    %33 = arith.addf %32, %25 : vector<64x1xf32>
    %cst_21 = arith.constant dense<0.000000e+00> : vector<1xf32>
    %34 = vector.multi_reduction <add>, %33, %cst_21 [0] : vector<64x1xf32> to vector<1xf32>
    %35 = vector.shape_cast %34 : vector<1xf32> to vector<1x1xf32>
    %cst_22 = arith.constant 6.400000e+01 : f32
    %36 = vector.broadcast %cst_22 : f32 to vector<1x1xf32>
    %37 = arith.divf %35, %36 : vector<1x1xf32>
    %38 = vector.broadcast %37 : vector<1x1xf32> to vector<64x1xf32>
    %39 = arith.subf %33, %38 : vector<64x1xf32>
    %40 = arith.mulf %39, %39 : vector<64x1xf32>
    %cst_23 = arith.constant dense<0.000000e+00> : vector<1xf32>
    %41 = vector.multi_reduction <add>, %40, %cst_23 [0] : vector<64x1xf32> to vector<1xf32>
    %42 = vector.shape_cast %41 : vector<1xf32> to vector<1x1xf32>
    %cst_24 = arith.constant 6.400000e+01 : f32
    %43 = vector.broadcast %cst_24 : f32 to vector<1x1xf32>
    %44 = arith.divf %42, %43 : vector<1x1xf32>
    %45 = vector.broadcast %37 : vector<1x1xf32> to vector<64x1xf32>
    %46 = arith.subf %33, %45 : vector<64x1xf32>
    %cst_25 = arith.constant 9.99999974E-6 : f32
    %47 = vector.broadcast %cst_25 : f32 to vector<1x1xf32>
    %48 = arith.addf %44, %47 : vector<1x1xf32>
    %49 = math.rsqrt %48 : vector<1x1xf32>
    %50 = vector.broadcast %49 : vector<1x1xf32> to vector<64x1xf32>
    %51 = arith.mulf %46, %50 : vector<64x1xf32>
    %52 = arith.mulf %51, %26 : vector<64x1xf32>
    %53 = arith.addf %52, %27 : vector<64x1xf32>
    %54 = arith.negf %53 : vector<64x1xf32>
    %55 = math.exp %54 : vector<64x1xf32>
    %cst_26 = arith.constant 1.000000e+00 : f32
    %56 = vector.broadcast %cst_26 : f32 to vector<64x1xf32>
    %57 = arith.addf %56, %55 : vector<64x1xf32>
    %58 = arith.divf %56, %57 : vector<64x1xf32>
    %cst_27 = arith.constant 2.560000e+02 : f32
    %59 = vector.broadcast %cst_27 : f32 to vector<64x1xf32>
    %60 = arith.divf %19, %59 : vector<64x1xf32>
    %cst_28 = arith.constant dense<0.000000e+00> : vector<32x1xf32>
    %61 = tpu.matmul %22, %60, %cst_28 {dimension_numbers = #tpu.dot_dimension_numbers<[1], [0], [0], [1], [0, 0, 1, 1], [], []>} : vector<32x64xf32>, vector<64x1xf32>, vector<32x1xf32> -> vector<32x1xf32>
    %62 = arith.addf %61, %28 : vector<32x1xf32>
    %cst_29 = arith.constant dense<0xFF800000> : vector<1xf32>
    %63 = vector.multi_reduction <maximumf>, %62, %cst_29 [0] : vector<32x1xf32> to vector<1xf32>
    %64 = vector.shape_cast %63 : vector<1xf32> to vector<1x1xf32>
    %65 = vector.broadcast %64 : vector<1x1xf32> to vector<32x1xf32>
    %66 = arith.subf %62, %65 : vector<32x1xf32>
    %67 = math.exp %66 : vector<32x1xf32>
    %cst_30 = arith.constant dense<0.000000e+00> : vector<1xf32>
    %68 = vector.multi_reduction <add>, %67, %cst_30 [0] : vector<32x1xf32> to vector<1xf32>
    %69 = vector.shape_cast %68 : vector<1xf32> to vector<1x1xf32>
    %70 = vector.broadcast %69 : vector<1x1xf32> to vector<32x1xf32>
    %71 = arith.divf %67, %70 : vector<32x1xf32>
    %72 = vector.broadcast %71 : vector<32x1xf32> to vector<32x64xf32>
    %73 = arith.mulf %23, %72 : vector<32x64xf32>
    %cst_31 = arith.constant dense<0.000000e+00> : vector<64xf32>
    %74 = vector.multi_reduction <add>, %73, %cst_31 [0] : vector<32x64xf32> to vector<64xf32>
    %75 = vector.shape_cast %74 : vector<64xf32> to vector<1x64xf32>
    %76 = arith.mulf %29, %71 : vector<32x1xf32>
    %cst_32 = arith.constant dense<0.000000e+00> : vector<1xf32>
    %77 = vector.multi_reduction <add>, %76, %cst_32 [0] : vector<32x1xf32> to vector<1xf32>
    %78 = vector.shape_cast %77 : vector<1xf32> to vector<1x1xf32>
    %79 = arith.truncf %75 : vector<1x64xf32> to vector<1x64xbf16>
    %cst_33 = arith.constant dense<0.000000e+00> : vector<1x256xf32>
    %80 = tpu.matmul %79, %2, %cst_33 {dimension_numbers = #tpu.dot_dimension_numbers<[1], [0], [0], [1], [0, 0, 1, 1], [], []>} : vector<1x64xbf16>, vector<64x256xbf16>, vector<1x256xf32> -> vector<1x256xf32>
    %81 = vector.broadcast %78 : vector<1x1xf32> to vector<1x256xf32>
    %82 = arith.addf %80, %81 : vector<1x256xf32>
    %83 = arith.negf %82 : vector<1x256xf32>
    %84 = math.exp %83 : vector<1x256xf32>
    %cst_34 = arith.constant 1.000000e+00 : f32
    %85 = vector.broadcast %cst_34 : f32 to vector<1x256xf32>
    %86 = arith.addf %85, %84 : vector<1x256xf32>
    %87 = arith.divf %85, %86 : vector<1x256xf32>
    %88 = vector.broadcast %58 : vector<64x1xf32> to vector<64x256xf32>
    %89 = vector.broadcast %87 : vector<1x256xf32> to vector<64x256xf32>
    %90 = arith.addf %88, %89 : vector<64x256xf32>
    %91 = arith.mulf %1, %90 : vector<64x256xf32>
    %c0_35 = arith.constant 0 : index
    %c0_36 = arith.constant 0 : index
    %c0_37 = arith.constant 0 : index
    %92 = vector.load %arg9[%c0_35, %c0_36, %c0_37] : memref<1x64x256xf32, #tpu.memory_space<vmem>>, vector<1x64x256xf32>
    %93 = vector.shape_cast %92 : vector<1x64x256xf32> to vector<64x256xf32>
    %94 = vector.shape_cast %91 : vector<64x256xf32> to vector<1x64x256xf32>
    tpu.vector_store %arg9[%c0_35, %c0_36, %c0_37], %94 {strides = array<i32>} : memref<1x64x256xf32, #tpu.memory_space<vmem>>, vector<1x64x256xf32>,
    return
  }
  func.func @transform_0(%arg0: i32) -> (i32, i32, i32) {
    %c0_i32 = arith.constant 0 : i32
    %c0_i32_0 = arith.constant 0 : i32
    %c0_i32_1 = arith.constant 0 : i32
    return %arg0, %c0_i32, %c0_i32_0 : i32, i32, i32
  }
  func.func @transform_1(%arg0: i32) -> (i32, i32) {
    %c0_i32 = arith.constant 0 : i32
    %c0_i32_0 = arith.constant 0 : i32
    %c0_i32_1 = arith.constant 0 : i32
    return %c0_i32, %c0_i32_0 : i32, i32
  }
  func.func @transform_2(%arg0: i32) -> (i32, i32) {
    %c0_i32 = arith.constant 0 : i32
    %c0_i32_0 = arith.constant 0 : i32
    %c0_i32_1 = arith.constant 0 : i32
    return %c0_i32, %c0_i32_0 : i32, i32
  }
  func.func @transform_3(%arg0: i32) -> (i32, i32) {
    %c0_i32 = arith.constant 0 : i32
    %c0_i32_0 = arith.constant 0 : i32
    %c0_i32_1 = arith.constant 0 : i32
    return %c0_i32, %c0_i32_0 : i32, i32
  }
  func.func @transform_4(%arg0: i32) -> (i32, i32) {
    %c0_i32 = arith.constant 0 : i32
    %c0_i32_0 = arith.constant 0 : i32
    %c0_i32_1 = arith.constant 0 : i32
    return %c0_i32, %c0_i32_0 : i32, i32
  }
  func.func @transform_5(%arg0: i32) -> (i32, i32) {
    %c0_i32 = arith.constant 0 : i32
    %c0_i32_0 = arith.constant 0 : i32
    %c0_i32_1 = arith.constant 0 : i32
    return %c0_i32, %c0_i32_0 : i32, i32
  }
  func.func @transform_6(%arg0: i32) -> (i32, i32) {
    %c0_i32 = arith.constant 0 : i32
    %c0_i32_0 = arith.constant 0 : i32
    %c0_i32_1 = arith.constant 0 : i32
    return %c0_i32, %c0_i32_0 : i32, i32
  }
  func.func @transform_7(%arg0: i32) -> (i32, i32) {
    %c0_i32 = arith.constant 0 : i32
    %c0_i32_0 = arith.constant 0 : i32
    %c0_i32_1 = arith.constant 0 : i32
    return %c0_i32, %c0_i32_0 : i32, i32
  }
  func.func @transform_8(%arg0: i32) -> (i32, i32, i32) {
    %c0_i32 = arith.constant 0 : i32
    %c0_i32_0 = arith.constant 0 : i32
    %c0_i32_1 = arith.constant 0 : i32
    return %arg0, %c0_i32, %c0_i32_0 : i32, i32, i32
  }
}

</mosaic_0001>

<bundles_post_ra>
// kernel: tpu_custom_call.1
= control target key start
LH: loop header
LB: loop body
LE: loop exit
PB: predicated region body
PF: predicated region fallthrough
CT: control target
= control target key end

     0   :  { %13 = vsyncpa [#allocation3], 0  ;;  %s2371_s0 = inlined_call_operand.hbm [shape: f32[2,64,256], index: 0, kind: input, shape index: {}]   ;;  %s2372_s1 = inlined_call_operand.vmem [shape: bf16[33,64], index: 1, kind: input, shape index: {}]   ;;  %s2373_s2 = inlined_call_operand.vmem [shape: f32[33,1], index: 2, kind: input, shape index: {}]   ;;  %s2374_s3 = inlined_call_operand.vmem [shape: f32[64,32], index: 3, kind: input, shape index: {}]   ;;  %s2375_s4 = inlined_call_operand.vmem [shape: f32[64,3], index: 4, kind: input, shape index: {}]   ;;  %s2376_s5 = inlined_call_operand.vmem [shape: f32[32,64], index: 5, kind: input, shape index: {}]   ;;  %s2377_s6 = inlined_call_operand.vmem [shape: f32[32,64], index: 6, kind: input, shape index: {}]   ;;  %s2378_s7 = inlined_call_operand.vmem [shape: f32[32,2], index: 7, kind: input, shape index: {}]   ;;  %s2379_s8 = inlined_call_operand.hbm [shape: f32[2,64,256], index: 8, kind: output, shape index: {}]  }
   0x1   :  { %15 = vsyncpa [#allocation3 + $0x1], 0 }
   0x2   :  { %16 = vsyncpa [#allocation4], 0 }
   0x3   :  { %18 = vsyncpa [#allocation4 + $0x1], 0  ;;  %s1782_s27 = smov 0   ;;  %s1784_s28 = smov 0  }
   0x4   :  { %s1786_s29 = smov 0   ;;  %s1788_s30 = smov 0  }
   0x5 LB: > { %s1803_s9 = sadd.s32 4294967295, %s1724_s30   ;;  %s1357_s10 = sadd.s32 4294967294, %s1724_s30   ;;  %s1724_s30 = sphi %s1788_s30, %s2392_s30   ;;  %s1720_s29 = sphi %s1786_s29, %s2391_s29   ;;  %s1716_s28 = sphi %s1784_s28, %s2390_s28   ;;  %s1712_s27 = sphi %s1782_s27, %s2389_s27  }
   0x6   : > { %s1807_s11 = sadd.s32 1, %s1724_s30   ;;  %s31_s12 = sadd.s32 1, %s1720_s29 }
   0x7   : > { %s28_s13 = ssub.s32 %s1724_s30, %s1807_s11  ;;  %p38_p0 = scmp.ne.s32.totalorder %s1720_s29, %s1716_s28 }
   0x8   : > { %p29_p1 = scmp.eq.s32.totalorder %s28_s13, 0  ;;  %p39_p2 = scmp.eq.s32.totalorder %s1724_s30, 0 }
   0x9   : > { %p44_p3 = scmp.ne.s32.totalorder %s1716_s28, %s1712_s27  ;;  %p45_p4 = scmp.eq.s32.totalorder %s1803_s9, 0 }
   0xa   : > { %s1819_s14 = scalar_select %p29_p1, %s1720_s29, %s31_s12  }
   0xb   : > { %p1821_p5 = por %p39_p2, %p38_p0  ;;  %p1825_p6 = por %p45_p4, %p44_p3 }
   0xc   : > { %p215_p7 = scmp.eq.s32.totalorder %s1803_s9, 1  ;;  %p221_p8 = scmp.eq.s32.totalorder %s1357_s10, 1 }
   0xd   : > { %p1504_p10 = scmp.lt.s32.totalorder %s1724_s30, 2  ;;  %s262_s19 = sand.u32 1, %s1720_s29  }
   0xe   : > { %p1832_p11 = por %p215_p7, %p38_p0  ;;  %p1836_p12 = por %p221_p8, %p44_p3 }
   0xf   : > { %s1400_s20 = sshll.u32 %s1724_s30, 11  ;;  %s1360_s21 = sshll.u32 %s262_s19, 7 }
  0x10   : > { %s2383_s17 = scalar_select %p1832_p11, 1, 0 }
  0x11   : > { %s2384_s18 = scalar_select %p1836_p12, 1, 0 }
  0x12   : > { %s1845_s24 = scalar_lea.hbm %s2371_s0, %s1400_s20  ;;  %s266_s25 = scalar_lea.vmem [#allocation2], %s1360_s21 }
  0x13   : > { %s273_s26 = sshll.u32 %s266_s25, 4  ;;  %p1849_p13 = pnand %p1504_p10, %p1821_p5  ;;  %s1853_s26 = int_to_ptr.vmem [resolvable:$true] %s273_s26 }
  0x14   : > { %s1855_s12 = scalar_lea.sflag [#allocation3], %s262_s19  ;;  %s1628_s13 = scalar_lea.hbm %s1845_s24, 2048 }
  0x15   : > { %p1629_p0 = scmp.ne.s32.totalorder %s1845_s24, %s1628_s13  ;;  %p1630_p1 = pneg %p1849_p13 }
  0x16   : > { %s1633_s21 = scalar_lea.hbm %s2371_s0, 4096  ;;  %p1634_p4 = scmp.lt.u32.totalorder %s1845_s24, %s2371_s0 }
  0x17   : > { %p1631_p2 = pnand %p1630_p1, %p1629_p0  ;;  %p1635_p5 = scmp.lt.u32.totalorder %s1633_s21, %s1628_s13 }
  0x18   : > { %p1637_p8 = scmp.lt.u32.totalorder %s1628_s13, %s1845_s24 }
  0x19   : > { %p1632_p3 = pneg %p1631_p2  ;;  %p1636_p7 = por %p1635_p5, %p1634_p4 }
  0x1b   : > { %p1638_p10 = por %p1637_p8, %p1636_p7 }
  0x1d   : > { %p1639_p9 = pnand %p1638_p10, %p1632_p3 }
  0x1f   : > { %1642 = shalt.err (!%p1639_p9)
}
  0x20   : > { %s1643_s19 = scalar_lea.vmem %s1853_s26, 2048  ;;  %s1726_s25 = smov [#allocation2]  }
  0x21   : > { %p1644_p0 = scmp.ne.s32.totalorder %s1853_s26, %s1643_s19  ;;  %s1648_s20 = sshll.u32 %s1726_s25, 4  ;;  %s1649_s20 = int_to_ptr.vmem [resolvable:$false] %s1648_s20 }
  0x22   : > { %s1650_s15 = scalar_lea.vmem %s1649_s20, 4096  ;;  %p1651_p11 = scmp.lt.s32.totalorder %s1853_s26, %s1649_s20 }
  0x23   : > { %p1646_p2 = pnand %p1644_p0, %p1630_p1  ;;  %p1652_p4 = scmp.lt.s32.totalorder %s1650_s15, %s1643_s19 }
  0x25   : > { %p1647_p12 = pneg %p1646_p2  ;;  %p1653_p5 = por %p1652_p4, %p1651_p11 }
  0x27   : > { %p1654_p7 = pnand %p1653_p5, %p1647_p12 }
  0x29   : > { %1657 = shalt.err (!%p1654_p7)
}
  0x2a   : > { %s1727_s13 = smov 256   ;;  %s1728_s21 = smov 16  }
  0x2b   : > { %1499 = dma.hbm_to_vmem [thread:$0]  (!%p1849_p13), %s1845_s24, 2048, %s1853_s26, %s1855_s12, %s1727_s13, %s1727_s13, %s1728_s21  }
  0x2c   : > { %p1363_p9 = scmp.ge.s32.totalorder %s1724_s30, 1  ;;  %p281_p1 = scmp.lt.s32.totalorder %s1724_s30, 3 }
  0x2e   : > { %p282_p3 = pnand %p1363_p9, %p281_p1 }
  0x2f   : > { %s1886_s22 = sand.u32 (!%p282_p3), 1, %s1716_s28  }
  0x30   : > { %285 = sbr.rel (%p282_p3) target bundleno = 1367 (0x557), region = 52  ;;  %s1364_s23 = sshll.u32 (!%p282_p3), %s1886_s22, 7 }
  0x31   : > { %s288_s19 = scalar_lea.sflag (!%p282_p3), [#allocation3], %s1886_s22  ;;  %s1892_s25 = scalar_lea.vmem (!%p282_p3), [#allocation2], %s1364_s23 }
  0x37   : > { %1703 = dma.done.wait (%p1825_p6), %s288_s19, 2048  }
  0x38   : > { %1705 = vsyncadd (%p1825_p6), %s288_s19, 4294965248  ;;  %v1729_v0 = vmov 0   ;;  %v1902_v1 = vld [vmem:[%s1892_s25 + $0x8] sm:$0xff]  ;;  %v1905_v2 = vld [vmem:[%s1892_s25 + $0x18] sm:$0xff]  ;;  %vm397_vm0 = vcmask 523264   ;;  %vm468_vm1 = vcmask 1040384   ;;  %v485_v58 = vlaneseq }
  0x39   : > { %439 = vmatprep.mubr.bf16.mxu0 %v1729_v0  ;;  %1548 = vset.pattern.permute.xlu1 %v1729_v0  ;;  %v1908_v3 = vld [vmem:[%s1892_s25] sm:$0xff]  ;;  %v342_v4 = vpack.c.bf16 %v1905_v2, %v1902_v1  ;;  %v1913_v5 = vld [vmem:[%s1892_s25 + $0x10] sm:$0xff]  ;;  %v1916_v6 = vld [vmem:[%s1892_s25 + $0x28] sm:$0xff]  ;;  %vm574_vm2 = vcmask 261120   ;;  %vm704_vm3 = vcmask 7168   ;;  %s1730_s12 = smov 127  }
  0x3a   : > { %1547 = vset.pattern.permute.xlu0 %v1729_v0  ;;  %v1919_v7 = vld [vmem:[%s1892_s25 + $0x38] sm:$0xff]  ;;  %v341_v8 = vpack.c.bf16 %v1913_v5, %v1908_v3  ;;  %v1926_v10 = vld [vmem:[%s1892_s25 + $0x20] sm:$0xff]  ;;  %v1929_v11 = vld [vmem:[%s1892_s25 + $0x30] sm:$0xff]  ;;  %v486_v60 = vshrl.u32 %v485_v58, 7  ;;  %s1731_s20 = smov 1   ;;  %s1732_s15 = smov 126  }
  0x3b   : > { %v344_v9 = vpack.c.bf16 %v1919_v7, %v1916_v6  ;;  %v1932_v12 = vld [vmem:[%s1892_s25 + $0x48] sm:$0xff]  ;;  %407 = vmatprep.subr.bf16.mxu0 %v342_v4  ;;  %v1935_v13 = vld [vmem:[%s1892_s25 + $0x58] sm:$0xff]  ;;  %v343_v14 = vpack.c.bf16 %v1929_v11, %v1926_v10  ;;  %v1940_v15 = vld [vmem:[%s1892_s25 + $0x40] sm:$0xff]  ;;  %vm1098_vm4 = vcmask 15368   ;;  %s1271_s19 = scalar_lea.sflag [#allocation4], %s1886_s22  ;;  %p2386_p11 = scmp.ne.s32.totalorder %s2383_s17, 0 }
  0x3c   : > { %408 = vmatpush1.bf16.msra.mxu0 %v341_v8  ;;  %v1943_v16 = vld [vmem:[%s1892_s25 + $0x50] sm:$0xff]  ;;  %v346_v17 = vpack.c.bf16 %v1935_v13, %v1932_v12  ;;  %v1948_v18 = vld [vmem:[%s1892_s25 + $0x68] sm:$0xff]  ;;  %v1951_v19 = vld [vmem:[%s1892_s25 + $0x78] sm:$0xff]  ;;  %v1997_v61 = vsub.s32 0, %v486_v60  ;;  %s1734_s24 = smov [#allocation5]  }
  0x3d   : > { %409 = vmatprep.subr.bf16.mxu0 %v344_v9  ;;  %v345_v20 = vpack.c.bf16 %v1943_v16, %v1940_v15  ;;  %v354_v21 = vld [vmem:[%s2373_s2] sm:$0xff]  ;;  %v348_v22 = vpack.c.bf16 %v1951_v19, %v1948_v18  ;;  %v1964_v24 = vld [vmem:[%s1892_s25 + $0x70] sm:$0xff]  ;;  %v355_v26 = vld [vmem:[%s2373_s2 + $0x8] sm:$0xff]  ;;  %s1662_s26 = sshll.u32 %s1734_s24, 4  ;;  %s1663_s26 = int_to_ptr.vmem [resolvable:$false] %s1662_s26 }
  0x3e   : > { %v1961_v23 = vld [vmem:[%s1892_s25 + $0x60] sm:$0xff]  ;;  %361 = vperm.xlu1 %1548, %v354_v21   ;;  %v356_v28 = vld [vmem:[%s2373_s2 + $0x10] sm:$0xff]  ;;  %v357_v30 = vld [vmem:[%s2373_s2 + $0x18] sm:$0xff] }
  0x3f   : > { %v358_v25 = vld [vmem:[%s2373_s2 + $0x20] sm:$0x1]  ;;  %v347_v27 = vpack.c.bf16 %v1964_v24, %v1961_v23  ;;  %v1552_v31 = vld [vmem:[%s2372_s1 + $0x8] sm:$0xff]   ;;  %v1553_v32 = vld [vmem:[%s2372_s1 + $0x10] ss:$0 sps:$4 sm:$0x11]  }
  0x40   : > { %410 = vmatpush1.bf16.msra.mxu0 %v343_v14  ;;  %381 = vperm.xlu0 %1547, %v358_v25   ;;  %v1551_v29 = vld [vmem:[%s2372_s1] sm:$0xff]   ;;  %v538_v58 = vld [vmem:[%s2374_s3 + $0x8] sm:$0xff]  ;;  %v539_v60 = vld [vmem:[%s2374_s3 + $0x10] sm:$0xff] }
  0x41   : > { %411 = vmatprep.subr.bf16.mxu0 %v346_v17 }
  0x42   : > { %366 = vperm.xlu1 %1548, %v355_v26  }
  0x44   : > { %412 = vmatpush1.bf16.msra.mxu0 %v345_v20 }
  0x45   : > { %413 = vmatprep.subr.bf16.mxu0 %v348_v22 }
  0x46   : > { %371 = vperm.xlu1 %1548, %v356_v28  }
  0x48   : > { %414 = vmatpush1.bf16.msra.mxu0 %v347_v27 }
  0x49   : > { %1121 = vmatprep.subr.bf16.mxu0 %v342_v4 }
  0x4a   : > { %376 = vperm.xlu1 %1548, %v357_v30  }
  0x4b   : > { %1369 = vmatmul.mubr.msk.bf16.vlgmr.msra.gmra.mrb[0].mxu0 %vm397_vm0, %v1551_v29 }
  0x4c   : > { %449 = vmatprep.mubr.bf16.mxu0 %v1729_v0  ;;  %1122 = vmatpush1.bf16.msra.mxu0 %v341_v8 }
  0x4d   : > { %1123 = vmatprep.subr.bf16.mxu0 %v344_v9 }
  0x50   : > { %1124 = vmatpush1.bf16.msra.mxu0 %v343_v14 }
  0x51   : > { %1125 = vmatprep.subr.bf16.mxu0 %v346_v17 }
  0x53   : > { %1370 = vmatmul.mubr.msk.bf16.gmra.mrb[4].mxu0 %vm397_vm0, %v1552_v31 }
  0x54   : > { %459 = vmatprep.mubr.bf16.mxu0 %v1729_v0  ;;  %1126 = vmatpush1.bf16.msra.mxu0 %v345_v20 }
  0x55   : > { %1127 = vmatprep.subr.bf16.mxu0 %v348_v22 }
  0x58   : > { %1128 = vmatpush1.bf16.msra.mxu0 %v347_v27 }
  0x5b   : > { %1371 = vmatmul.mubr.msk.bf16.gmra.mrb[8].mxu0 %vm397_vm0, %v1553_v32 }
  0x5c   : > { %1153 = vmatprep.mubr.bf16.mxu0 %v1729_v0 }
  0xbd   : > { %v362_v51 = vpop.permute.xlu1 %361 }
  0xbf   : > { %v382_v41 = vpop.permute.xlu0 %381 }
  0xc1   : > { %v367_v55 = vpop.permute.xlu1 %366 }
  0xc5   : > { %v372_v59 = vpop.permute.xlu1 %371 }
  0xc9   : > { %v377_v62 = vpop.permute.xlu1 %376 }
 0x11e   : > { %v441_v33 = vpop.f32.mrb[0].mxu0 }
 0x11f   : > { %v443_v34 = vpop.f32.mrb[1].mxu0  ;;  %v442_v4 = vadd.f32 %v441_v33, %v362_v51 }
 0x120   : > { %v445_v35 = vpop.f32.mrb[2].mxu0  ;;  %v444_v8 = vadd.f32 %v443_v34, %v362_v51 }
 0x121   : > { %v447_v36 = vpop.f32.mrb[3].mxu0  ;;  %v446_v9 = vadd.f32 %v445_v35, %v367_v55 }
 0x122   : > { %v448_v14 = vadd.f32 %v447_v36, %v367_v55 }
 0x126   : > { %v451_v37 = vpop.f32.mrb[4].mxu0 }
 0x127   : > { %v453_v38 = vpop.f32.mrb[5].mxu0  ;;  %v452_v20 = vadd.f32 %v451_v37, %v372_v59 }
 0x128   : > { %v455_v39 = vpop.f32.mrb[6].mxu0  ;;  %v454_v21 = vadd.f32 %v453_v38, %v372_v59  ;;  %v516_v38 = vadd.f32 %v1905_v2, %v1913_v5  ;;  %v513_v2 = vadd.f32 %v1902_v1, %v1908_v3  ;;  %v519_v5 = vadd.f32 %v1916_v6, %v1926_v10 }
 0x129   : > { %v457_v40 = vpop.f32.mrb[7].mxu0  ;;  %v456_v26 = vadd.f32 %v455_v39, %v377_v62 }
 0x12a   : > { %v458_v27 = vadd.f32 %v457_v40, %v377_v62 }
 0x12e   : > { %v461_v42 = vpop.f32.mrb[8].mxu0 }
 0x12f   : > { %v462_v43 = vadd.f32 %v461_v42, %v382_v41  ;;  %v463_v44 = vpop.f32.mrb[9].mxu0 }
 0x130   : > { %v464_v45 = vadd.f32 %v463_v44, %v382_v41  ;;  %v465_v46 = vpop.f32.mrb[10].mxu0  ;;  %v522_v44 = vadd.f32 %v1919_v7, %v1929_v11  ;;  %v525_v7 = vadd.f32 %v1932_v12, %v1940_v15  ;;  %v531_v11 = vadd.f32 %v1948_v18, %v1961_v23 }
 0x131   : > { %v466_v47 = vpop.f32.mrb[11].mxu0  ;;  %v469_v48 = vsel %vm468_vm1, %v462_v43, -inf  ;;  %v534_v46 = vadd.f32 %v1951_v19, %v1964_v24 }
 0x132   : > { %v470_v49 = vsel %vm468_vm1, %v464_v45, -inf }
 0x133   : > { %v471_v50 = vmax.f32 %v469_v48, %v470_v49 }
 0x135   : > { %472 = vmax.xlane.f32.xlu0 %v471_v50 }
 0x1c2   : > { %v473_v52 = vpop.xlane.xlu0 %472 }
 0x1c3   : > { %v474_v53 = vsub.f32 %v462_v43, %v473_v52  ;;  %v475_v54 = vsub.f32 %v464_v45, %v473_v52  ;;  %v528_v45 = vadd.f32 %v1935_v13, %v1943_v16  ;;  %v537_v13 = vld [vmem:[%s2374_s3] sm:$0xff] }
 0x1c4   : > { %1434 = vmatprep.mubr.msk.f32.mxu1 %vm574_vm2, %v537_v13  ;;  %v2109_v13 = vld [vmem:[%s2375_s4 + $0x20] sm:$0xff] }
 0x1c5   : > { %v476_v56 = vmul.f32 1.442695, %v474_v53  ;;  %v478_v57 = vmul.f32 1.442695, %v475_v54 }
 0x1c7   : > { %1554 = vpow2.f32 %v476_v56 }
 0x1c8   : > { %1556 = vpow2.f32 %v478_v57 }
 0x1d1   : > { %v1555_v63 = vpop.eup %1554 }
 0x1d2   : > { %v1557_v17 = vpop.eup %1556  ;;  %v480_v22 = vsel %vm468_vm1, %v1555_v63, 0.0  ;;  %v488_v25 = vrot.slane %v1555_v63, %v1997_v61 }
 0x1d3   : > { %v481_v28 = vsel %vm468_vm1, %v1557_v17, 0.0  ;;  %v492_v29 = vrot.slane %v1557_v17, %v1997_v61  ;;  %v541_v17 = vld [vmem:[%s2374_s3 + $0x20] sm:$0xff] }
 0x1d4   : > { %v482_v30 = vadd.f32 %v481_v28, %v480_v22  ;;  %v493_v31 = vmul.f32 %v488_v25, %v442_v4  ;;  %v495_v32 = vmul.f32 %v488_v25, %v446_v9  ;;  %v497_v33 = vmul.f32 %v488_v25, %v452_v20 }
 0x1d5   : > { %v494_v34 = vmul.f32 %v492_v29, %v444_v8  ;;  %v496_v35 = vmul.f32 %v492_v29, %v448_v14  ;;  %v498_v36 = vmul.f32 %v492_v29, %v454_v21  ;;  %v499_v41 = vmul.f32 %v488_v25, %v456_v26  ;;  %v540_v8 = vld [vmem:[%s2374_s3 + $0x18] sm:$0xff]  ;;  %v542_v25 = vld [vmem:[%s2374_s3 + $0x28] sm:$0xff] }
 0x1d6   : > { %483 = vadd.xlane.f32.xlu1 %v482_v30  ;;  %v500_v37 = vmul.f32 %v492_v29, %v458_v27  ;;  %v543_v27 = vld [vmem:[%s2374_s3 + $0x30] sm:$0xff]  ;;  %v544_v29 = vld [vmem:[%s2374_s3 + $0x38] sm:$0xff]  ;;  %v553_v30 = vld [vmem:[%s2376_s5] sm:$0xff] }
 0x1d7   : > { %v501_v42 = vadd.f32 %v494_v34, %v493_v31  ;;  %v504_v39 = vadd.f32 %v496_v35, %v495_v32  ;;  %v507_v40 = vadd.f32 %v498_v36, %v497_v33  ;;  %v554_v31 = vld [vmem:[%s2376_s5 + $0x8] sm:$0xff]  ;;  %v555_v32 = vld [vmem:[%s2376_s5 + $0x10] sm:$0xff]  ;;  %v556_v33 = vld [vmem:[%s2376_s5 + $0x18] sm:$0xff] }
 0x1d8   : > { %v510_v43 = vadd.f32 %v500_v37, %v499_v41  ;;  %v2071_v34 = vld [vmem:[%s2375_s4 + $0x8] sm:$0xff]  ;;  %v2076_v35 = vld [vmem:[%s2375_s4] sm:$0xff] }
 0x1d9   : > { %502 = vadd.xlane.f32.xlu0 %v501_v42  ;;  %v2087_v42 = vld [vmem:[%s2375_s4 + $0x18] sm:$0xff] }
 0x1da   : > { %517 = vadd.xlane.f32.xlu1 %v516_v38 }
 0x1dd   : > { %505 = vadd.xlane.f32.xlu0 %v504_v39 }
 0x1de   : > { %523 = vadd.xlane.f32.xlu1 %v522_v44 }
 0x1e1   : > { %508 = vadd.xlane.f32.xlu0 %v507_v40  ;;  %v2094_v40 = vld [vmem:[%s2375_s4 + $0x10] sm:$0xff] }
 0x1e2   : > { %529 = vadd.xlane.f32.xlu1 %v528_v45 }
 0x1e5   : > { %511 = vadd.xlane.f32.xlu0 %v510_v43 }
 0x1e6   : > { %535 = vadd.xlane.f32.xlu1 %v534_v46 }
 0x1e9   : > { %514 = vadd.xlane.f32.xlu0 %v513_v2 }
 0x1ed   : > { %520 = vadd.xlane.f32.xlu0 %v519_v5 }
 0x1f1   : > { %526 = vadd.xlane.f32.xlu0 %v525_v7  ;;  %v2103_v7 = vld [vmem:[%s2375_s4 + $0x28] sm:$0xff] }
 0x1f5   : > { %532 = vadd.xlane.f32.xlu0 %v531_v11 }
 0x263   : > { %v484_v1 = vpop.xlane.xlu1 %483 }
 0x264   : > { %v568_v3 = vrot.slane %v484_v1, %v1997_v61 }
 0x266   : > { %1558 = vrcp.f32 %v568_v3  ;;  %v503_v6 = vpop.xlane.xlu0 %502 }
 0x267   : > { %v518_v16 = vpop.xlane.xlu1 %517 }
 0x268   : > { %v898_v51 = vmul.f32 0.00390625, %v518_v16 }
 0x26a   : > { %v506_v10 = vpop.xlane.xlu0 %505 }
 0x26b   : > { %v524_v23 = vpop.xlane.xlu1 %523 }
 0x26c   : > { %v900_v56 = vmul.f32 0.00390625, %v524_v23 }
 0x26e   : > { %v509_v12 = vpop.xlane.xlu0 %508 }
 0x26f   : > { %v530_v54 = vpop.xlane.xlu1 %529 }
 0x270   : > { %v1559_v15 = vpop.eup %1558  ;;  %v902_v63 = vmul.f32 0.00390625, %v530_v54 }
 0x271   : > { %v570_v19 = vmul.f32 %v1559_v15, %v503_v6  ;;  %v571_v24 = vmul.f32 %v1559_v15, %v506_v10  ;;  %v572_v47 = vmul.f32 %v1559_v15, %v509_v12 }
 0x272   : > { %v512_v18 = vpop.xlane.xlu0 %511 }
 0x273   : > { %v573_v48 = vmul.f32 %v1559_v15, %v512_v18  ;;  %v1468_v49 = vpack.c.bf16 %v571_v24, %v570_v19  ;;  %v536_v9 = vpop.xlane.xlu1 %535  ;;  %v2117_v15 = vld [vmem:[%s2375_s4 + $0x38] sm:$0xff]  ;;  %v2123_v18 = vld [vmem:[%s2375_s4 + $0x30] sm:$0xff] }
 0x274   : > { %v904_v21 = vmul.f32 0.00390625, %v536_v9  ;;  %v2154_v9 = vld [vmem:[%s2378_s7 + $0x10] sm:$0xff] }
 0x275   : > { %v1472_v50 = vpack.c.bf16 %v573_v48, %v572_v47  ;;  %1469 = vmatprep.subr.bf16.mxu1 %v1468_v49 }
 0x276   : > { %1471 = vmatpush3.bf16.msra.mxu1 %v1468_v49  ;;  %v515_v52 = vpop.xlane.xlu0 %514 }
 0x277   : > { %1473 = vmatprep.subr.bf16.mxu1 %v1472_v50  ;;  %v897_v53 = vmul.f32 0.00390625, %v515_v52  ;;  %v2131_v52 = vld [vmem:[%s2378_s7 + $0x8] sm:$0xff] }
 0x279   : > { %v1476_v55 = vpack.c.bf16 %v898_v51, %v897_v53 }
 0x27a   : > { %1475 = vmatpush3.bf16.msra.mxu1 %v1472_v50  ;;  %v521_v57 = vpop.xlane.xlu0 %520 }
 0x27b   : > { %v899_v59 = vmul.f32 0.00390625, %v521_v57  ;;  %1477 = vmatprep.subr.bf16.mxu1 %v1476_v55 }
 0x27d   : > { %v1480_v62 = vpack.c.bf16 %v900_v56, %v899_v59  ;;  %1435 = vmatmul.mubr.msk.f32.vlgmr.msra.gmra.mrb[0].mxu1 %vm574_vm2, %v538_v58 }
 0x27e   : > { %1479 = vmatpush3.bf16.msra.mxu1 %v1476_v55  ;;  %1437 = vmatprep.mubr.msk.f32.mxu1 %vm574_vm2, %v539_v60  ;;  %v527_v4 = vpop.xlane.xlu0 %526  ;;  %v2137_v55 = vld [vmem:[%s2378_s7] sm:$0xff] }
 0x27f   : > { %v901_v14 = vmul.f32 0.00390625, %v527_v4  ;;  %1481 = vmatprep.subr.bf16.mxu1 %v1480_v62 }
 0x281   : > { %v1484_v20 = vpack.c.bf16 %v902_v63, %v901_v14  ;;  %1438 = vmatmul.mubr.msk.f32.gmra.mrb[2].mxu1 %vm574_vm2, %v540_v8  ;;  %v2147_v63 = vld [vmem:[%s2378_s7 + $0x18] sm:$0xff] }
 0x282   : > { %1483 = vmatpush3.bf16.msra.mxu1 %v1480_v62  ;;  %1440 = vmatprep.mubr.msk.f32.mxu1 %vm574_vm2, %v541_v17  ;;  %v533_v22 = vpop.xlane.xlu0 %532 }
 0x283   : > { %v903_v26 = vmul.f32 0.00390625, %v533_v22  ;;  %1485 = vmatprep.subr.bf16.mxu1 %v1484_v20 }
 0x285   : > { %v1488_v28 = vpack.c.bf16 %v904_v21, %v903_v26  ;;  %1441 = vmatmul.mubr.msk.f32.gmra.mrb[4].mxu1 %vm574_vm2, %v542_v25 }
 0x286   : > { %1487 = vmatpush3.bf16.msra.mxu1 %v1484_v20  ;;  %1443 = vmatprep.mubr.msk.f32.mxu1 %vm574_vm2, %v543_v27 }
 0x287   : > { %1489 = vmatprep.subr.bf16.mxu1 %v1488_v28 }
 0x289   : > { %1444 = vmatmul.mubr.msk.f32.gmra.mrb[6].mxu1 %vm574_vm2, %v544_v29 }
 0x28a   : > { %1491 = vmatpush3.bf16.msra.mxu1 %v1488_v28  ;;  %1462 = vmatprep.mubr.msk.f32.mxu1 %vm397_vm0, %v553_v30 }
 0x28d   : > { %1463 = vmatmul.mubr.msk.f32.vlgmr.msra.gmra.mrb[8].mxu1 %vm397_vm0, %v554_v31 }
 0x28e   : > { %1465 = vmatprep.mubr.msk.f32.mxu1 %vm397_vm0, %v555_v32 }
 0x291   : > { %1466 = vmatmul.mubr.msk.f32.gmra.mrb[10].mxu1 %vm397_vm0, %v556_v33 }
 0x350   : > { %v1436_v36 = vpop.f32.mrb[0].mxu1 }
 0x351   : > { %v2079_v41 = vadd.f32 %v1436_v36, %v2071_v34  ;;  %v665_v37 = vpop.f32.mrb[1].mxu1 }
 0x352   : > { %v2082_v38 = vadd.f32 %v665_v37, %v2076_v35 }
 0x353   : > { %v706_v39 = vsel %vm704_vm3, %v2079_v41, 0.0 }
 0x354   : > { %v705_v43 = vsel %vm704_vm3, %v2082_v38, 0.0  ;;  %v1439_v44 = vpop.f32.mrb[2].mxu1 }
 0x355   : > { %v707_v45 = vadd.f32 %v706_v39, %v705_v43  ;;  %v681_v46 = vadd.f32 %v1439_v44, %v2087_v42  ;;  %v675_v2 = vpop.f32.mrb[3].mxu1 }
 0x356   : > { %v676_v5 = vadd.f32 %v675_v2, %v2094_v40 }
 0x357   : > { %v710_v11 = vsel %vm704_vm3, %v681_v46, 0.0 }
 0x358   : > { %v708_v1 = vsel %vm704_vm3, %v676_v5, 0.0  ;;  %v1442_v3 = vpop.f32.mrb[4].mxu1 }
 0x359   : > { %v709_v6 = vadd.f32 %v708_v1, %v707_v45  ;;  %v691_v10 = vadd.f32 %v1442_v3, %v2103_v7  ;;  %v685_v16 = vpop.f32.mrb[5].mxu1 }
 0x35a   : > { %v686_v12 = vadd.f32 %v685_v16, %v2109_v13 }
 0x35b   : > { %v714_v19 = vsel %vm704_vm3, %v691_v10, 0.0  ;;  %v711_v24 = vadd.f32 %v710_v11, %v709_v6 }
 0x35c   : > { %v712_v23 = vsel %vm704_vm3, %v686_v12, 0.0  ;;  %v1445_v47 = vpop.f32.mrb[6].mxu1 }
 0x35d   : > { %v713_v48 = vadd.f32 %v712_v23, %v711_v24  ;;  %v701_v49 = vadd.f32 %v1445_v47, %v2117_v15  ;;  %v695_v50 = vpop.f32.mrb[7].mxu1 }
 0x35e   : > { %v696_v51 = vadd.f32 %v695_v50, %v2123_v18 }
 0x35f   : > { %v718_v53 = vsel %vm704_vm3, %v701_v49, 0.0  ;;  %v715_v54 = vadd.f32 %v714_v19, %v713_v48 }
 0x360   : > { %v716_v56 = vsel %vm704_vm3, %v696_v51, 0.0  ;;  %v1464_v57 = vpop.f32.mrb[8].mxu1 }
 0x361   : > { %v717_v58 = vadd.f32 %v716_v56, %v715_v54  ;;  %v2141_v59 = vadd.f32 %v1464_v57, %v2131_v52  ;;  %v983_v60 = vpop.f32.mrb[9].mxu1 }
 0x362   : > { %v984_v62 = vadd.f32 %v983_v60, %v2137_v55 }
 0x363   : > { %v719_v4 = vadd.f32 %v718_v53, %v717_v58  ;;  %v1003_v8 = vsel %vm704_vm3, %v2141_v59, -inf }
 0x364   : > { %v1002_v14 = vsel %vm704_vm3, %v984_v62, -inf  ;;  %v1467_v17 = vpop.f32.mrb[10].mxu1 }
 0x365   : > { %v720_v20 = vrot.slane %v719_v4, 4  ;;  %v1006_v21 = vmax.f32 %v1002_v14, %v1003_v8  ;;  %v999_v22 = vadd.f32 %v1467_v17, %v2147_v63  ;;  %v993_v25 = vpop.f32.mrb[11].mxu1 }
 0x366   : > { %v994_v26 = vadd.f32 %v993_v25, %v2154_v9 }
 0x367   : > { %v721_v27 = vadd.f32 %v720_v20, %v719_v4  ;;  %v1005_v28 = vsel %vm704_vm3, %v999_v22, -inf }
 0x368   : > { %v1004_v29 = vsel %vm704_vm3, %v994_v26, -inf }
 0x369   : > { %v722_v30 = vrot.slane %v721_v27, 2  ;;  %v1007_v31 = vmax.f32 %v1004_v29, %v1005_v28 }
 0x36b   : > { %v723_v32 = vadd.f32 %v722_v30, %v721_v27  ;;  %v1008_v33 = vmax.f32 %v1006_v21, %v1007_v31 }
 0x36d   : > { %v724_v36 = vrot.slane %v723_v32, 1  ;;  %v1009_v37 = vrot.slane %v1008_v33, 4 }
 0x36f   : > { %v725_v39 = vadd.f32 %v724_v36, %v723_v32  ;;  %v1010_v43 = vmax.f32 %v1008_v33, %v1009_v37 }
 0x371   : > { %v727_v44 = vmul.f32 0.015625, %v725_v39  ;;  %v1011_v45 = vrot.slane %v1010_v43, 2 }
 0x373   : > { %v2162_v2 = vsub.f32 %v2082_v38, %v727_v44  ;;  %v2165_v11 = vsub.f32 %v2079_v41, %v727_v44  ;;  %v2167_v1 = vsub.f32 %v676_v5, %v727_v44  ;;  %v2169_v3 = vsub.f32 %v681_v46, %v727_v44 }
 0x374   : > { %v2171_v6 = vsub.f32 %v686_v12, %v727_v44  ;;  %v2173_v16 = vsub.f32 %v691_v10, %v727_v44  ;;  %v2175_v19 = vsub.f32 %v696_v51, %v727_v44  ;;  %v2177_v24 = vsub.f32 %v701_v49, %v727_v44 }
 0x375   : > { %v736_v23 = vmul.f32 %v2162_v2, %v2162_v2  ;;  %v737_v38 = vmul.f32 %v2165_v11, %v2165_v11  ;;  %v738_v41 = vmul.f32 %v2167_v1, %v2167_v1  ;;  %v739_v46 = vmul.f32 %v2169_v3, %v2169_v3 }
 0x376   : > { %v740_v5 = vmul.f32 %v2171_v6, %v2171_v6  ;;  %v741_v10 = vmul.f32 %v2173_v16, %v2173_v16  ;;  %v742_v12 = vmul.f32 %v2175_v19, %v2175_v19  ;;  %v743_v47 = vmul.f32 %v2177_v24, %v2177_v24 }
 0x377   : > { %v744_v48 = vsel %vm704_vm3, %v736_v23, 0.0  ;;  %v745_v49 = vsel %vm704_vm3, %v737_v38, 0.0  ;;  %v747_v50 = vsel %vm704_vm3, %v738_v41, 0.0  ;;  %v749_v51 = vsel %vm704_vm3, %v739_v46, 0.0 }
 0x378   : > { %v746_v53 = vadd.f32 %v745_v49, %v744_v48  ;;  %v751_v54 = vsel %vm704_vm3, %v740_v5, 0.0  ;;  %v753_v56 = vsel %vm704_vm3, %v741_v10, 0.0  ;;  %v755_v57 = vsel %vm704_vm3, %v742_v12, 0.0 }
 0x379   : > { %v757_v58 = vsel %vm704_vm3, %v743_v47, 0.0  ;;  %v1012_v60 = vmax.f32 %v1010_v43, %v1011_v45 }
 0x37a   : > { %v748_v4 = vadd.f32 %v747_v50, %v746_v53 }
 0x37b   : > { %v1013_v8 = vrot.slane %v1012_v60, 1 }
 0x37c   : > { %v750_v14 = vadd.f32 %v749_v51, %v748_v4 }
 0x37d   : > { %v1014_v17 = vmax.f32 %v1012_v60, %v1013_v8 }
 0x37e   : > { %v752_v20 = vadd.f32 %v751_v54, %v750_v14 }
 0x37f   : > { %v1015_v21 = vsub.f32 %v984_v62, %v1014_v17  ;;  %v1017_v25 = vsub.f32 %v994_v26, %v1014_v17  ;;  %v1018_v27 = vsub.f32 %v999_v22, %v1014_v17  ;;  %v1016_v28 = vsub.f32 %v2141_v59, %v1014_v17 }
 0x380   : > { %v754_v29 = vadd.f32 %v753_v56, %v752_v20 }
 0x381   : > { %v1019_v30 = vmul.f32 1.442695, %v1015_v21  ;;  %v1023_v31 = vmul.f32 1.442695, %v1017_v25  ;;  %v1021_v33 = vmul.f32 1.442695, %v1016_v28 }
 0x382   : > { %v756_v32 = vadd.f32 %v755_v57, %v754_v29  ;;  %v1025_v37 = vmul.f32 1.442695, %v1018_v27 }
 0x383   : > { %1560 = vpow2.f32 %v1019_v30 }
 0x384   : > { %v758_v36 = vadd.f32 %v757_v58, %v756_v32  ;;  %1562 = vpow2.f32 %v1023_v31 }
 0x385   : > { %1564 = vpow2.f32 %v1021_v33 }
 0x386   : > { %v759_v39 = vrot.slane %v758_v36, 4  ;;  %1566 = vpow2.f32 %v1025_v37 }
 0x388   : > { %v760_v43 = vadd.f32 %v759_v39, %v758_v36 }
 0x38a   : > { %v761_v44 = vrot.slane %v760_v43, 2 }
 0x38c   : > { %v762_v45 = vadd.f32 %v761_v44, %v760_v43 }
 0x38d   : > { %v1561_v62 = vpop.eup %1560 }
 0x38e   : > { %v763_v26 = vrot.slane %v762_v45, 1  ;;  %v1563_v22 = vpop.eup %1562  ;;  %v1027_v59 = vsel %vm704_vm3, %v1561_v62, 0.0 }
 0x38f   : > { %v1565_v23 = vpop.eup %1564  ;;  %v1030_v12 = vsel %vm704_vm3, %v1563_v22, 0.0 }
 0x390   : > { %v764_v38 = vadd.f32 %v763_v26, %v762_v45  ;;  %v1028_v41 = vsel %vm704_vm3, %v1565_v23, 0.0  ;;  %v1567_v46 = vpop.eup %1566 }
 0x391   : > { %v1029_v10 = vadd.f32 %v1028_v41, %v1027_v59  ;;  %v1032_v49 = vsel %vm704_vm3, %v1567_v46, 0.0 }
 0x392   : > { %v765_v5 = vmul.f32 0.015625, %v764_v38 }
 0x393   : > { %v1031_v48 = vadd.f32 %v1030_v12, %v1029_v10 }
 0x394   : > { %v766_v47 = vadd.f32 1e-05, %v765_v5 }
 0x395   : > { %v1033_v50 = vadd.f32 %v1032_v49, %v1031_v48 }
 0x396   : > { %1568 = vrsqrt.f32 %v766_v47 }
 0x397   : > { %v1034_v51 = vrot.slane %v1033_v50, 4 }
 0x399   : > { %v1035_v53 = vadd.f32 %v1034_v51, %v1033_v50 }
 0x39b   : > { %v1036_v54 = vrot.slane %v1035_v53, 2 }
 0x39d   : > { %v1037_v56 = vadd.f32 %v1036_v54, %v1035_v53 }
 0x39f   : > { %v1038_v58 = vrot.slane %v1037_v56, 1 }
 0x3a0   : > { %v1569_v57 = vpop.eup %1568 }
 0x3a1   : > { %v2209_v60 = vmul.f32 %v1569_v57, %v2162_v2  ;;  %v2212_v4 = vmul.f32 %v1569_v57, %v2165_v11  ;;  %v2215_v8 = vmul.f32 %v1569_v57, %v2167_v1  ;;  %v2218_v14 = vmul.f32 %v1569_v57, %v2169_v3 }
 0x3a2   : > { %v1039_v17 = vadd.f32 %v1038_v58, %v1037_v56  ;;  %v2221_v20 = vmul.f32 %v1569_v57, %v2173_v16  ;;  %v2224_v21 = vmul.f32 %v1569_v57, %v2171_v6  ;;  %v2227_v25 = vmul.f32 %v1569_v57, %v2175_v19 }
 0x3a3   : > { %v2230_v2 = vmul.f32 %v1569_v57, %v2177_v24  ;;  %v1733_v6 = vmov 1  }
 0x3a4   : > { %1570 = vrcp.f32 %v1039_v17 }
 0x3ae   : > { %v1571_v11 = vpop.eup %1570 }
 0x3af   : > { %v1042_v1 = vmul.f32 %v1571_v11, %v1565_v23  ;;  %v1041_v27 = vmul.f32 %v1571_v11, %v1561_v62  ;;  %v1043_v28 = vmul.f32 %v1571_v11, %v1563_v22  ;;  %v1044_v3 = vmul.f32 %v1571_v11, %v1567_v46 }
 0x3b1   : > { %1052 = vperm.xlu1 %1548, %v1042_v1   ;;  %1047 = vperm.xlu0 %1547, %v1041_v27  }
 0x3b5   : > { %1057 = vperm.xlu1 %1548, %v1043_v28   ;;  %1062 = vperm.xlu0 %1547, %v1044_v3  }
 0x3b9   : > { %784 = vrot.lane.b32.xlu1 %v2076_v35, %s1730_s12  ;;  %786 = vrot.lane.b32.xlu0 %v2071_v34, %s1730_s12 }
 0x3ba   : > { %1549 = vset.pattern.permute.xlu1 %v1733_v6 }
 0x3bd   : > { %788 = vrot.lane.b32.xlu1 %v2094_v40, %s1730_s12  ;;  %790 = vrot.lane.b32.xlu0 %v2087_v42, %s1730_s12 }
 0x3c1   : > { %1082 = vrot.lane.b32.xlu1 %v1041_v27, %s1731_s20  ;;  %1084 = vrot.lane.b32.xlu0 %v1042_v1, %s1731_s20 }
 0x3c5   : > { %1086 = vrot.lane.b32.xlu1 %v1043_v28, %s1731_s20  ;;  %794 = vrot.lane.b32.xlu0 %v2103_v7, %s1730_s12 }
 0x3c9   : > { %1088 = vrot.lane.b32.xlu0 %v1044_v3, %s1731_s20  ;;  %792 = vrot.lane.b32.xlu1 %v2109_v13, %s1730_s12  ;;  %s1401_s20 = sshll.u32 %s1803_s9, 11 }
 0x3ca   : > { %s2313_s21 = scalar_lea.hbm %s2379_s8, %s1401_s20 }
 0x3cd   : > { %796 = vrot.lane.b32.xlu1 %v2123_v18, %s1730_s12  ;;  %798 = vrot.lane.b32.xlu0 %v2117_v15, %s1730_s12 }
 0x3d1   : > { %816 = vrot.lane.b32.xlu1 %v2076_v35, %s1732_s15  ;;  %818 = vrot.lane.b32.xlu0 %v2071_v34, %s1732_s15  ;;  %v558_v35 = vld [vmem:[%s2377_s6 + $0x8] sm:$0xff]  ;;  %v557_v34 = vld [vmem:[%s2377_s6] sm:$0xff] }
 0x3d5   : > { %820 = vrot.lane.b32.xlu1 %v2094_v40, %s1732_s15  ;;  %822 = vrot.lane.b32.xlu0 %v2087_v42, %s1732_s15 }
 0x3d9   : > { %824 = vrot.lane.b32.xlu1 %v2109_v13, %s1732_s15  ;;  %826 = vrot.lane.b32.xlu0 %v2103_v7, %s1732_s15  ;;  %v559_v7 = vld [vmem:[%s2377_s6 + $0x10] sm:$0xff] }
 0x3dd   : > { %828 = vrot.lane.b32.xlu1 %v2123_v18, %s1732_s15  ;;  %830 = vrot.lane.b32.xlu0 %v2117_v15, %s1732_s15  ;;  %v560_v15 = vld [vmem:[%s2377_s6 + $0x18] sm:$0xff]  ;;  %s2295_s15 = scalar_lea.vmem [#allocation5], %s1364_s23 }
 0x3de   : > { %s1284_s13 = sshll.u32 %s2295_s15, 4  ;;  %s2315_s13 = int_to_ptr.vmem [resolvable:$true] %s1284_s13 }
 0x3df   : > { %s1658_s16 = scalar_lea.vmem %s2315_s13, 2048  ;;  %p1665_p8 = scmp.lt.s32.totalorder %s2315_s13, %s1663_s26 }
 0x3e0   : > { %p1659_p6 = scmp.ne.s32.totalorder %s2315_s13, %s1658_s16 }
 0x3e2   : > { %p1660_p12 = pnand %p1659_p6, %p2386_p11 }
 0x3e4   : > { %p1661_p13 = pneg %p1660_p12 }
 0x430   : > { %v1053_v40 = vpop.permute.xlu1 %1052  ;;  %v1048_v42 = vpop.permute.xlu0 %1047 }
 0x431   : > { %v1066_v16 = vmul.f32 %v1053_v40, %v558_v35  ;;  %v1065_v13 = vmul.f32 %v1048_v42, %v557_v34 }
 0x433   : > { %v1070_v18 = vsel %vm397_vm0, %v1066_v16, 0.0  ;;  %v1069_v19 = vsel %vm397_vm0, %v1065_v13, 0.0 }
 0x434   : > { %v1058_v24 = vpop.permute.xlu1 %1057  ;;  %v1063_v29 = vpop.permute.xlu0 %1062  ;;  %v1071_v32 = vadd.f32 %v1070_v18, %v1069_v19 }
 0x435   : > { %v1067_v30 = vmul.f32 %v1058_v24, %v559_v7  ;;  %v1068_v31 = vmul.f32 %v1063_v29, %v560_v15 }
 0x437   : > { %v1072_v33 = vsel %vm397_vm0, %v1067_v30, 0.0  ;;  %v1074_v43 = vsel %vm397_vm0, %v1068_v31, 0.0 }
 0x438   : > { %v1073_v36 = vadd.f32 %v1072_v33, %v1071_v32  ;;  %v785_v37 = vpop.permute.xlu1 %784  ;;  %v787_v39 = vpop.permute.xlu0 %786 }
 0x439   : > { %v809_v3 = vmul.f32 %v787_v39, %v2212_v4 }
 0x43a   : > { %v1075_v44 = vadd.f32 %v1074_v43, %v1073_v36 }
 0x43c   : > { %v1076_v45 = vrot.slane %v1075_v44, 4  ;;  %v789_v62 = vpop.permute.xlu1 %788  ;;  %v791_v26 = vpop.permute.xlu0 %790 }
 0x43d   : > { %v811_v13 = vmul.f32 %v791_v26, %v2218_v14 }
 0x43e   : > { %v1077_v22 = vadd.f32 %v1076_v45, %v1075_v44 }
 0x440   : > { %v1078_v59 = vrot.slane %v1077_v22, 2  ;;  %v1083_v23 = vpop.permute.xlu1 %1082  ;;  %v1085_v38 = vpop.permute.xlu0 %1084 }
 0x441   : > { %v1094_v41 = vmul.f32 %v1083_v23, %v2137_v55  ;;  %v1095_v46 = vmul.f32 %v1085_v38, %v2131_v52 }
 0x442   : > { %v1079_v5 = vadd.f32 %v1078_v59, %v1077_v22 }
 0x443   : > { %v1099_v48 = vsel %vm1098_vm4, %v1094_v41, 0.0  ;;  %v1100_v49 = vsel %vm1098_vm4, %v1095_v46, 0.0 }
 0x444   : > { %v1080_v10 = vrot.slane %v1079_v5, 1  ;;  %v1087_v12 = vpop.permute.xlu1 %1086  ;;  %v795_v47 = vpop.permute.xlu0 %794  ;;  %v1101_v56 = vadd.f32 %v1100_v49, %v1099_v48 }
 0x445   : > { %v1096_v50 = vmul.f32 %v1087_v12, %v2154_v9  ;;  %v808_v9 = vmul.f32 %v785_v37, %v2209_v60  ;;  %v813_v30 = vmul.f32 %v795_v47, %v2221_v20 }
 0x446   : > { %v1081_v51 = vadd.f32 %v1080_v10, %v1079_v5 }
 0x447   : > { %v1102_v53 = vsel %vm1098_vm4, %v1096_v50, 0.0 }
 0x448   : > { %v1112_v54 = vpack.c.bf16 %v1081_v51, %v1081_v51  ;;  %v793_v57 = vpop.permute.xlu1 %792  ;;  %v1089_v55 = vpop.permute.xlu0 %1088  ;;  %v1103_v58 = vadd.f32 %v1102_v53, %v1101_v56 }
 0x449   : > { %v1097_v52 = vmul.f32 %v1089_v55, %v2147_v63  ;;  %v810_v63 = vmul.f32 %v789_v62, %v2215_v8  ;;  %v812_v31 = vmul.f32 %v793_v57, %v2224_v21 }
 0x44a   : > { %1392 = vmatmul.mubr.msk.bf16.vlgmr.msra.gmra.mrb[12].mxu0 %vm397_vm0, %v1112_v54 }
 0x44b   : > { %v1104_v17 = vsel %vm1098_vm4, %v1097_v52, 0.0 }
 0x44c   : > { %v1105_v11 = vadd.f32 %v1104_v17, %v1103_v58  ;;  %v797_v1 = vpop.permute.xlu1 %796  ;;  %v799_v27 = vpop.permute.xlu0 %798 }
 0x44d   : > { %v814_v43 = vmul.f32 %v797_v1, %v2227_v25  ;;  %v815_v44 = vmul.f32 %v799_v27, %v2230_v2 }
 0x44e   : > { %v1106_v28 = vrot.slane %v1105_v11, 4 }
 0x450   : > { %v1107_v6 = vadd.f32 %v1106_v28, %v1105_v11  ;;  %v817_v35 = vpop.permute.xlu1 %816  ;;  %v819_v34 = vpop.permute.xlu0 %818 }
 0x451   : > { %v840_v40 = vadd.f32 %v817_v35, %v808_v9  ;;  %v841_v42 = vadd.f32 %v819_v34, %v809_v3 }
 0x452   : > { %v1108_v16 = vrot.slane %v1107_v6, 2 }
 0x453   : > { %v1380_v7 = vmul.f32 -1.442695, %v840_v40  ;;  %v1381_v15 = vmul.f32 -1.442695, %v841_v42 }
 0x454   : > { %v821_v18 = vpop.permute.xlu1 %820  ;;  %v823_v19 = vpop.permute.xlu0 %822  ;;  %v1109_v24 = vadd.f32 %v1108_v16, %v1107_v6 }
 0x455   : > { %1572 = vpow2.f32 %v1380_v7  ;;  %v842_v29 = vadd.f32 %v821_v18, %v810_v63  ;;  %v843_v60 = vadd.f32 %v823_v19, %v811_v13 }
 0x456   : > { %1574 = vpow2.f32 %v1381_v15  ;;  %v1110_v4 = vrot.slane %v1109_v24, 1 }
 0x457   : > { %v1382_v32 = vmul.f32 -1.442695, %v842_v29  ;;  %v1383_v33 = vmul.f32 -1.442695, %v843_v60 }
 0x458   : > { %v825_v36 = vpop.permute.xlu1 %824  ;;  %v827_v8 = vpop.permute.xlu0 %826  ;;  %v1111_v37 = vadd.f32 %v1110_v4, %v1109_v24 }
 0x459   : > { %1576 = vpow2.f32 %v1382_v32  ;;  %v844_v14 = vadd.f32 %v825_v36, %v812_v31  ;;  %v845_v39 = vadd.f32 %v827_v8, %v813_v30 }
 0x45a   : > { %1578 = vpow2.f32 %v1383_v33  ;;  %1115 = vperm.xlu1 %1549, %v1111_v37  }
 0x45b   : > { %v1384_v45 = vmul.f32 -1.442695, %v844_v14  ;;  %v1385_v62 = vmul.f32 -1.442695, %v845_v39 }
 0x45c   : > { %v829_v26 = vpop.permute.xlu1 %828  ;;  %v831_v20 = vpop.permute.xlu0 %830 }
 0x45d   : > { %1580 = vpow2.f32 %v1384_v45  ;;  %v846_v21 = vadd.f32 %v829_v26, %v814_v43  ;;  %v847_v22 = vadd.f32 %v831_v20, %v815_v44  ;;  %v1612_v26 = vld [vmem:[%s1892_s25] sm:$0xff] }
 0x45e   : > { %1582 = vpow2.f32 %v1385_v62  ;;  %1550 = vset.pattern.permute.xlu1 %v1729_v0 }
 0x45f   : > { %v1573_v59 = vpop.eup %1572  ;;  %v1386_v23 = vmul.f32 -1.442695, %v846_v21  ;;  %v1387_v46 = vmul.f32 -1.442695, %v847_v22  ;;  %v1614_v22 = vld [vmem:[%s1892_s25 + $0x20] sm:$0xff] }
 0x460   : > { %v1575_v38 = vpop.eup %1574  ;;  %v872_v41 = vadd.f32 1.0, %v1573_v59 }
 0x461   : > { %v873_v5 = vadd.f32 1.0, %v1575_v38  ;;  %1584 = vpow2.f32 %v1386_v23  ;;  %v1615_v23 = vld [vmem:[%s1892_s25 + $0x30] sm:$0xff] }
 0x462   : > { %1586 = vrcp.f32 %v872_v41  ;;  %v1616_v41 = vld [vmem:[%s1892_s25 + $0x40] sm:$0xff] }
 0x463   : > { %v1577_v25 = vpop.eup %1576  ;;  %1588 = vrcp.f32 %v873_v5  ;;  %v1617_v5 = vld [vmem:[%s1892_s25 + $0x50] sm:$0xff] }
 0x464   : > { %v1579_v2 = vpop.eup %1578  ;;  %v874_v10 = vadd.f32 1.0, %v1577_v25  ;;  %1590 = vpow2.f32 %v1387_v46 }
 0x465   : > { %v875_v12 = vadd.f32 1.0, %v1579_v2  ;;  %v1618_v2 = vld [vmem:[%s1892_s25 + $0x60] sm:$0xff] }
 0x466   : > { %1592 = vrcp.f32 %v874_v10 }
 0x467   : > { %v1581_v47 = vpop.eup %1580  ;;  %1594 = vrcp.f32 %v875_v12  ;;  %v1619_v12 = vld [vmem:[%s1892_s25 + $0x70] sm:$0xff] }
 0x468   : > { %v1583_v48 = vpop.eup %1582  ;;  %v876_v49 = vadd.f32 1.0, %v1581_v47 }
 0x469   : > { %v877_v0 = vadd.f32 1.0, %v1583_v48 }
 0x46a   : > { %1596 = vrcp.f32 %v876_v49 }
 0x46b   : > { %v1585_v50 = vpop.eup %1584  ;;  %1598 = vrcp.f32 %v877_v0 }
 0x46c   : > { %v1587_v51 = vpop.eup %1586  ;;  %v878_v53 = vadd.f32 1.0, %v1585_v50 }
 0x46d   : > { %v1589_v54 = vpop.eup %1588  ;;  %1176 = vperm.xlu0 %1547, %v1587_v51  }
 0x46e   : > { %v1591_v56 = vpop.eup %1590  ;;  %1600 = vrcp.f32 %v878_v53  ;;  %1181 = vperm.xlu1 %1550, %v1589_v54  }
 0x46f   : > { %v879_v57 = vadd.f32 1.0, %v1591_v56 }
 0x470   : > { %v1593_v55 = vpop.eup %1592 }
 0x471   : > { %v1595_v52 = vpop.eup %1594  ;;  %1602 = vrcp.f32 %v879_v57  ;;  %1186 = vperm.xlu0 %1547, %v1593_v55   ;;  %v1620_v57 = vld [vmem:[%s1892_s25 + $0x8] sm:$0xff] }
 0x472   : > { %1191 = vperm.xlu1 %1550, %v1595_v52   ;;  %v1621_v52 = vld [vmem:[%s1892_s25 + $0x18] sm:$0xff] }
 0x474   : > { %v1597_v58 = vpop.eup %1596 }
 0x475   : > { %v1599_v17 = vpop.eup %1598  ;;  %1196 = vperm.xlu0 %1547, %v1597_v58  }
 0x476   : > { %1201 = vperm.xlu1 %1550, %v1599_v17   ;;  %v1622_v17 = vld [vmem:[%s1892_s25 + $0x28] sm:$0xff] }
 0x478   : > { %v1601_v11 = vpop.eup %1600 }
 0x479   : > { %1206 = vperm.xlu0 %1547, %v1601_v11  }
 0x47b   : > { %v1603_v1 = vpop.eup %1602 }
 0x47c   : > { %1211 = vperm.xlu1 %1550, %v1603_v1   ;;  %v1623_v1 = vld [vmem:[%s1892_s25 + $0x38] sm:$0xff] }
 0x4d9   : > { %v1116_v27 = vpop.permute.xlu1 %1115 }
 0x4ec   : > { %v1177_v63 = vpop.permute.xlu0 %1176 }
 0x4ed   : > { %v1182_v16 = vpop.permute.xlu1 %1181 }
 0x4f0   : > { %v1187_v24 = vpop.permute.xlu0 %1186 }
 0x4f1   : > { %v1192_v19 = vpop.permute.xlu1 %1191 }
 0x4f4   : > { %v1197_v60 = vpop.permute.xlu0 %1196 }
 0x4f5   : > { %v1202_v29 = vpop.permute.xlu1 %1201 }
 0x4f8   : > { %v1207_v36 = vpop.permute.xlu0 %1206 }
 0x4fb   : > { %v1212_v33 = vpop.permute.xlu1 %1211 }
 0x51d   : > { %v1155_v28 = vpop.f32.mrb[12].mxu0 }
 0x51e   : > { %v1156_v9 = vadd.f32 %v1155_v28, %v1116_v27  ;;  %v1157_v3 = vpop.f32.mrb[13].mxu0  ;;  %v1624_v28 = vld [vmem:[%s1892_s25 + $0x48] sm:$0xff] }
 0x51f   : > { %v1158_v6 = vadd.f32 %v1157_v3, %v1116_v27  ;;  %v1159_v35 = vpop.f32.mrb[14].mxu0  ;;  %v1625_v3 = vld [vmem:[%s1892_s25 + $0x58] sm:$0xff] }
 0x520   : > { %v1393_v34 = vmul.f32 -1.442695, %v1156_v9  ;;  %v1160_v40 = vpop.f32.mrb[15].mxu0  ;;  %v1626_v35 = vld [vmem:[%s1892_s25 + $0x68] sm:$0xff] }
 0x521   : > { %v1394_v42 = vmul.f32 -1.442695, %v1158_v6  ;;  %v1627_v40 = vld [vmem:[%s1892_s25 + $0x78] sm:$0xff] }
 0x522   : > { %1604 = vpow2.f32 %v1393_v34 }
 0x523   : > { %1606 = vpow2.f32 %v1394_v42 }
 0x52c   : > { %v1605_v13 = vpop.eup %1604 }
 0x52d   : > { %v1607_v7 = vpop.eup %1606  ;;  %v1168_v15 = vadd.f32 1.0, %v1605_v13 }
 0x52e   : > { %v1169_v18 = vadd.f32 1.0, %v1607_v7 }
 0x52f   : > { %1608 = vrcp.f32 %v1168_v15 }
 0x530   : > { %1610 = vrcp.f32 %v1169_v18 }
 0x539   : > { %v1609_v4 = vpop.eup %1608 }
 0x53a   : > { %v1611_v30 = vpop.eup %1610  ;;  %v1217_v31 = vrot.slane %v1609_v4, %v1997_v61 }
 0x53b   : > { %v1221_v32 = vrot.slane %v1611_v30, %v1997_v61  ;;  %v1613_v61 = vld [vmem:[%s1892_s25 + $0x10] sm:$0xff]  ;;  %s1664_s25 = scalar_lea.vmem %s1663_s26, 4096 }
 0x53c   : > { %v1222_v8 = vadd.f32 %v1217_v31, %v1177_v63  ;;  %v1224_v37 = vadd.f32 %v1217_v31, %v1182_v16  ;;  %v1226_v14 = vadd.f32 %v1217_v31, %v1187_v24  ;;  %v1228_v39 = vadd.f32 %v1217_v31, %v1192_v19  ;;  %p1666_p10 = scmp.lt.s32.totalorder %s1664_s25, %s1658_s16 }
 0x53d   : > { %v1230_v43 = vadd.f32 %v1217_v31, %v1197_v60  ;;  %v1232_v44 = vadd.f32 %v1217_v31, %v1202_v29  ;;  %v1234_v45 = vadd.f32 %v1217_v31, %v1207_v36  ;;  %v1236_v62 = vadd.f32 %v1217_v31, %v1212_v33 }
 0x53e   : > { %v1238_v20 = vmul.f32 %v1612_v26, %v1222_v8  ;;  %v1240_v21 = vmul.f32 %v1613_v61, %v1224_v37  ;;  %v1242_v59 = vmul.f32 %v1614_v22, %v1226_v14  ;;  %v1244_v38 = vmul.f32 %v1615_v23, %v1228_v39  ;;  %p1667_p0 = por %p1666_p10, %p1665_p8 }
 0x53f   : > { %v1246_v46 = vmul.f32 %v1616_v41, %v1230_v43  ;;  %v1248_v25 = vmul.f32 %v1617_v5, %v1232_v44  ;;  %v1250_v10 = vmul.f32 %v1618_v2, %v1234_v45  ;;  %v1252_v47 = vmul.f32 %v1619_v12, %v1236_v62 }
 0x540   : > { %1254 = vst [vmem:[%s2295_s15] sm:$0xff] %v1238_v20  ;;  %1256 = vst [vmem:[%s2295_s15 + $0x10] sm:$0xff] %v1240_v21  ;;  %v1223_v48 = vadd.f32 %v1221_v32, %v1177_v63  ;;  %v1225_v49 = vadd.f32 %v1221_v32, %v1182_v16  ;;  %v1227_v0 = vadd.f32 %v1221_v32, %v1187_v24  ;;  %p1668_p2 = pnand %p1667_p0, %p1661_p13 }
 0x541   : > { %1258 = vst [vmem:[%s2295_s15 + $0x20] sm:$0xff] %v1242_v59  ;;  %1260 = vst [vmem:[%s2295_s15 + $0x30] sm:$0xff] %v1244_v38  ;;  %v1229_v50 = vadd.f32 %v1221_v32, %v1192_v19  ;;  %v1231_v51 = vadd.f32 %v1221_v32, %v1197_v60  ;;  %v1233_v53 = vadd.f32 %v1221_v32, %v1202_v29 }
 0x542   : > { %1262 = vst [vmem:[%s2295_s15 + $0x40] sm:$0xff] %v1246_v46  ;;  %1264 = vst [vmem:[%s2295_s15 + $0x50] sm:$0xff] %v1248_v25  ;;  %v1235_v54 = vadd.f32 %v1221_v32, %v1207_v36  ;;  %v1237_v56 = vadd.f32 %v1221_v32, %v1212_v33  ;;  %v1239_v55 = vmul.f32 %v1620_v57, %v1223_v48 }
 0x543   : > { %1266 = vst [vmem:[%s2295_s15 + $0x60] sm:$0xff] %v1250_v10  ;;  %1268 = vst [vmem:[%s2295_s15 + $0x70] sm:$0xff] %v1252_v47  ;;  %v1241_v58 = vmul.f32 %v1621_v52, %v1225_v49  ;;  %v1243_v11 = vmul.f32 %v1622_v17, %v1227_v0  ;;  %v1245_v27 = vmul.f32 %v1623_v1, %v1229_v50 }
 0x544   : > { %v1247_v9 = vmul.f32 %v1624_v28, %v1231_v51  ;;  %v1249_v6 = vmul.f32 %v1625_v3, %v1233_v53  ;;  %v1251_v34 = vmul.f32 %v1626_v35, %v1235_v54  ;;  %v1253_v42 = vmul.f32 %v1627_v40, %v1237_v56  ;;  %1255 = vst [vmem:[%s2295_s15 + $0x8] sm:$0xff] %v1239_v55 }
 0x545   : > { %1257 = vst [vmem:[%s2295_s15 + $0x18] sm:$0xff] %v1241_v58  ;;  %1259 = vst [vmem:[%s2295_s15 + $0x28] sm:$0xff] %v1243_v11 }
 0x546   : > { %1261 = vst [vmem:[%s2295_s15 + $0x38] sm:$0xff] %v1245_v27  ;;  %1263 = vst [vmem:[%s2295_s15 + $0x48] sm:$0xff] %v1247_v9 }
 0x547   : > { %1265 = vst [vmem:[%s2295_s15 + $0x58] sm:$0xff] %v1249_v6  ;;  %1267 = vst [vmem:[%s2295_s15 + $0x68] sm:$0xff] %v1251_v34 }
 0x548   : > { %1269 = vst [vmem:[%s2295_s15 + $0x78] sm:$0xff] %v1253_v42 }
 0x549   : > { %1671 = shalt.err (!%p1668_p2)
}
 0x54a   : > { %s1672_s10 = scalar_lea.hbm %s2313_s21, 2048  ;;  %s1676_s15 = scalar_lea.hbm %s2379_s8, 4096 }
 0x54b   : > { %p1673_p4 = scmp.ne.s32.totalorder %s2313_s21, %s1672_s10  ;;  %p1677_p9 = scmp.lt.u32.totalorder %s2313_s21, %s2379_s8 }
 0x54c   : > { %p1678_p1 = scmp.lt.u32.totalorder %s1676_s15, %s1672_s10  ;;  %p1680_p6 = scmp.lt.u32.totalorder %s1672_s10, %s2313_s21 }
 0x54d   : > { %p1674_p5 = pnand %p1673_p4, %p2386_p11 }
 0x54e   : > { %p1679_p3 = por %p1678_p1, %p1677_p9 }
 0x54f   : > { %p1675_p7 = pneg %p1674_p5 }
 0x550   : > { %p1681_p12 = por %p1680_p6, %p1679_p3 }
 0x552   : > { %p1682_p13 = pnand %p1681_p12, %p1675_p7 }
 0x554   : > { %1685 = shalt.err (!%p1682_p13)
}
 0x555   : > { %s1735_s16 = smov 256   ;;  %s1736_s24 = smov 16  }
 0x556   : > { %1494 = dma.vmem_to_hbm [thread:$0]  (%p2386_p11), %s2315_s13, 2048, %s2313_s21, %s1271_s19, %s1735_s16, %s1735_s16, %s1736_s24  }
 0x557 PF: > { %s1299_s26 = sand.u32 1, %s1712_s27   ;;  %p2387_p8 = scmp.ne.s32.totalorder %s2384_s18, 0 }
 0x558   : > { %p2388_p10 = scmp.ge.s32.totalorder %s1724_s30, 2  ;;  %s1300_s25 = scalar_lea.sflag [#allocation4], %s1299_s26 }
 0x55a   : > { %p1501_p0 = pnand %p2388_p10, %p2387_p8 }
 0x55c   : > { %1707 = dma.done.wait (!%p1501_p0), %s1300_s25, 2048  }
 0x55d   : > { %1709 = vsyncadd (!%p1501_p0), %s1300_s25, 4294965248  ;;  %p21_p2 = scmp.ge.s32.totalorder %s1807_s11, 4   ;;  %s2389_s27 = smov %s1716_s28 }
 0x55e   : > { %s2390_s28 = smov %s1720_s29  ;;  %s2391_s29 = smov %s1819_s14 }
 0x55f   : > { %s2392_s30 = smov %s1807_s11  ;;  %23 = sbr.rel (!%p21_p2) target bundleno = 5 (0x5), region = 97 }
 0x566   :  { %1305 = vsyncpa [#allocation3], 1 }
 0x567   :  { %1307 = vsyncpa [#allocation3 + $0x1], 1 }
 0x568   :  { %1308 = vsyncpa [#allocation4], 1 }
 0x569   :  { %1310 = vsyncpa [#allocation4 + $0x1], 1 }

</bundles_post_ra>
